<compile_context>
chip_gen: v7x
topology: tpu7x:2x2x1
jax: 0.10.0
libtpu: 0.0.40
codegen_flags: <defaults>
</compile_context>

<pallas_src>
import functools

import jax
import jax.numpy as jnp
import numpy as np
from jax.experimental import pallas as pl
from jax.experimental.pallas import tpu as pltpu


def _pick_tile(n, max_tile):
    """Largest lane-aligned (multiple of 128) divisor of n that is <= max_tile.

    Falls back to the full extent n (always a legal block dim)."""
    if n <= max_tile:
        return n
    t = (max_tile // 128) * 128
    while t >= 128:
        if n % t == 0:
            return t
        t -= 128
    return n


def fsmm_kernel(params_ref,                     # SMEM (7,): cQ,c_f,k0,R0,cRC,invC1,b2
                x_i_ref,                        # (tm, D)  row tile of x
                xT_i_ref,                       # (D, tm)  row tile of x^T
                xT_j_ref,                       # (D, tn)  col tile of x^T
                w1_ref,                         # (H, D)   fc1 weight
                w1t_ref,                        # (D, H)   fc1 weight, transposed
                b1r_ref,                        # (1, H)
                b1c_ref,                        # (H, 1)
                w2r_ref,                        # (1, H)   fc2 weight (row)
                w2c_ref,                        # (H, 1)   fc2 weight (col)
                wprod_ref,                      # (1, H)   w2 * w1[:, last]
                soc_ref,                        # out (1, tm)
                loss1_ref,                      # out (1, tm)
                loss2_ref,                      # out (tm, tn)
                term_scratch,                   # VMEM (tm, 1)
                *, e0, e1):
    j = pl.program_id(1)

    cQ = params_ref[0]      # delta / Q
    c_f = params_ref[1]     # sum(a1w * a2w)
    k0 = params_ref[2]      # sum(a1b * a2w) + a2b
    R0 = params_ref[3]
    cRC = params_ref[4]     # delta / (R1 * C1)
    invC1 = params_ref[5]   # 1 / C1
    b2 = params_ref[6]

    # ---- per-row-tile work: runs once per row tile (j is the inner axis) ----
    @pl.when(j == 0)
    def _():
        # Row layout ("batch on lanes") -> lane-dense soc / loss1 outputs.
        xT_i = xT_i_ref[...]                                            # (D, tm)
        z_r = jnp.dot(w1_ref[...], xT_i,
                      preferred_element_type=jnp.float32) + b1c_ref[...]  # (H, tm)
        h_r = jnp.maximum(z_r, 0.0)
        mask_r = (z_r > 0.0).astype(jnp.float32)
        soc_row = jnp.dot(w2r_ref[...], h_r,
                          preferred_element_type=jnp.float32) + b2        # (1, tm)
        dsoc_row = jnp.dot(wprod_ref[...], mask_r,
                           preferred_element_type=jnp.float32)            # (1, tm)
        x1_row = xT_i[1:2, :]
        soc_ref[...] = soc_row
        loss1_ref[...] = cQ * x1_row + dsoc_row

        # Column layout ("batch on sublanes") -> loss2 row term, cached in VMEM.
        x_i = x_i_ref[...]                                              # (tm, D)
        z_c = jnp.dot(x_i, w1t_ref[...],
                      preferred_element_type=jnp.float32) + b1r_ref[...]  # (tm, H)
        h_c = jnp.maximum(z_c, 0.0)
        soc_col = jnp.dot(h_c, w2c_ref[...],
                          preferred_element_type=jnp.float32) + b2        # (tm, 1)
        x0_col = x_i[:, 0:1]
        x1_col = x_i[:, 1:2]
        u1_col = x0_col - (c_f * soc_col + k0) - R0 * x1_col              # (tm, 1)
        term_scratch[...] = cRC * u1_col - invC1 * x1_col                 # (tm, 1)

    # ---- per-(row,col)-tile work: d u1 / d x[:, last] over the column tile ----
    xT_j = xT_j_ref[...]                                                  # (D, tn)
    z_j = jnp.dot(w1_ref[...], xT_j,
                  preferred_element_type=jnp.float32) + b1c_ref[...]      # (H, tn)
    mask_j = (z_j > 0.0).astype(jnp.float32)
    dsoc_j = jnp.dot(wprod_ref[...], mask_j,
                     preferred_element_type=jnp.float32)                  # (1, tn)
    d_u1_row = (e0 - R0 * e1) - c_f * dsoc_j                              # (1, tn)

    # loss2[i, j] = d_u1[j] + delta/(R1*C1)*u1[i] - x[i,1]/C1  (PyTorch broadcast)
    loss2_ref[...] = term_scratch[...] + d_u1_row                         # (tm, tn)


def fsmm_forward(x, params, *, max_tile_m=256, max_tile_n=1024):
    """params: dict of arrays with PyTorch-convention shapes. Returns (soc, loss1, loss2)."""
    x = jnp.asarray(x, jnp.float32)
    B, D = x.shape
    H = params["w1"].shape[0]
    last = D - 1
    e0 = 1.0 if last == 0 else 0.0
    e1 = 1.0 if last == 1 else 0.0

    w1 = jnp.asarray(params["w1"], jnp.float32)                # (H, D)
    b1 = jnp.asarray(params["b1"], jnp.float32).reshape(H)
    w2 = jnp.asarray(params["w2"], jnp.float32).reshape(H)     # fc2 weight
    b2 = jnp.asarray(params["b2"], jnp.float32).reshape(())
    a1w = jnp.asarray(params["a1w"], jnp.float32).reshape(H)   # f_f_soc1 weight
    a1b = jnp.asarray(params["a1b"], jnp.float32).reshape(H)
    a2w = jnp.asarray(params["a2w"], jnp.float32).reshape(H)   # f_f_soc2 weight
    a2b = jnp.asarray(params["a2b"], jnp.float32).reshape(())

    Q = jnp.float32(params["Q"])
    delta = jnp.float32(params["delta"])
    R0 = jnp.float32(params["R0"])
    C1 = jnp.float32(params["C1"])
    R1 = jnp.float32(params["R1"])

    # Fold the (purely linear-in-soc) f_soc head: f_soc = c_f * soc + k0.
    c_f = jnp.sum(a1w * a2w)
    k0 = jnp.sum(a1b * a2w) + a2b

    scalars = jnp.stack([delta / Q, c_f, k0, R0,
                         delta / (R1 * C1), 1.0 / C1, b2]).astype(jnp.float32)

    xT = x.T                                                   # (D, B)
    w1t = w1.T                                                 # (D, H)
    b1r = b1.reshape(1, H)
    b1c = b1.reshape(H, 1)
    w2r = w2.reshape(1, H)
    w2c = w2.reshape(H, 1)
    wprod_r = (w2 * w1[:, last]).reshape(1, H)

    tile_m = _pick_tile(B, max_tile_m)
    tile_n = _pick_tile(B, max_tile_n)
    ni = B // tile_m
    nj = B // tile_n

    kernel = functools.partial(fsmm_kernel, e0=e0, e1=e1)

    grid_spec = pltpu.PrefetchScalarGridSpec(
        num_scalar_prefetch=1,
        grid=(ni, nj),
        in_specs=[
            pl.BlockSpec((tile_m, D), lambda i, j, p: (i, 0)),   # x row tile
            pl.BlockSpec((D, tile_m), lambda i, j, p: (0, i)),   # xT row tile
            pl.BlockSpec((D, tile_n), lambda i, j, p: (0, j)),   # xT col tile
            pl.BlockSpec((H, D), lambda i, j, p: (0, 0)),        # w1
            pl.BlockSpec((D, H), lambda i, j, p: (0, 0)),        # w1t
            pl.BlockSpec((1, H), lambda i, j, p: (0, 0)),        # b1 row
            pl.BlockSpec((H, 1), lambda i, j, p: (0, 0)),        # b1 col
            pl.BlockSpec((1, H), lambda i, j, p: (0, 0)),        # w2 row
            pl.BlockSpec((H, 1), lambda i, j, p: (0, 0)),        # w2 col
            pl.BlockSpec((1, H), lambda i, j, p: (0, 0)),        # wprod row
        ],
        out_specs=(
            pl.BlockSpec((1, tile_m), lambda i, j, p: (0, i)),          # soc (row form)
            pl.BlockSpec((1, tile_m), lambda i, j, p: (0, i)),          # loss1 (row form)
            pl.BlockSpec((tile_m, tile_n), lambda i, j, p: (i, j)),     # loss2
        ),
        scratch_shapes=[pltpu.VMEM((tile_m, 1), jnp.float32)],
    )

    out_shape = (
        jax.ShapeDtypeStruct((1, B), jnp.float32),    # soc  (lane-dense row)
        jax.ShapeDtypeStruct((1, B), jnp.float32),    # loss1 (lane-dense row)
        jax.ShapeDtypeStruct((B, B), jnp.float32),    # loss2 (PyTorch broadcast quirk)
    )

    cost = pl.CostEstimate(
        flops=int(6 * B * D * H + 8 * B * H + 2 * B * B),
        transcendentals=0,
        bytes_accessed=int(4 * (B * B + 3 * B * D + 2 * B + 2 * H * D + 5 * H)),
    )

    soc_row, loss1_row, loss2 = pl.pallas_call(
        kernel,
        grid_spec=grid_spec,
        out_shape=out_shape,
        compiler_params=pltpu.CompilerParams(
            dimension_semantics=("parallel", "arbitrary"),
            vmem_limit_bytes=32 * 1024 * 1024,
        ),
        cost_estimate=cost,
    )(scalars, x, xT, xT, w1, w1t, b1r, b1c, w2r, w2c, wprod_r)

    return soc_row.reshape(B, 1), loss1_row.reshape(B, 1), loss2


def _reference(x, p):
    """Pure-JAX reference using autodiff for the input gradients."""
    w1, b1, w2, b2 = p["w1"], p["b1"], p["w2"], p["b2"]
    a1w, a1b, a2w, a2b = p["a1w"], p["a1b"], p["a2w"], p["a2b"]
    Q, delta, R0, C1, R1 = p["Q"], p["delta"], p["R0"], p["C1"], p["R1"]

    def mlp(xi):
        h = jnp.maximum(xi @ w1.T + b1, 0.0)
        return (h @ w2.T + b2)[0]

    def u1_fn(xi):
        s = mlp(xi)
        f = (s * a1w[:, 0] + a1b) @ a2w[0] + a2b[0]
        return xi[0] - f - xi[1] * R0

    soc = jax.vmap(mlp)(x).reshape(-1, 1)
    dsoc = jax.vmap(jax.grad(mlp))(x)[:, -1].reshape(-1, 1)
    loss1 = (delta / Q) * x[:, 1:2] + dsoc
    u1 = jax.vmap(u1_fn)(x).reshape(-1, 1)
    du1 = jax.vmap(jax.grad(u1_fn))(x)[:, -1]          # (B,)
    loss2 = du1[None, :] + (delta / (R1 * C1)) * u1 - x[:, 1:2] / C1
    return soc, loss1, loss2


if __name__ == "__main__":
    input_size = 4
    hidden_size = 32
    batch = 256

    key = jax.random.PRNGKey(0)
    keys = jax.random.split(key, 10)

    params = {
        "w1": 0.3 * jax.random.normal(keys[0], (hidden_size, input_size), jnp.float32),
        "b1": 0.1 * jax.random.normal(keys[1], (hidden_size,), jnp.float32),
        "w2": 0.3 * jax.random.normal(keys[2], (1, hidden_size), jnp.float32),
        "b2": 0.1 * jax.random.normal(keys[3], (1,), jnp.float32),
        "a1w": 0.3 * jax.random.normal(keys[4], (hidden_size, 1), jnp.float32),
        "a1b": 0.1 * jax.random.normal(keys[5], (hidden_size,), jnp.float32),
        "a2w": 0.3 * jax.random.normal(keys[6], (1, hidden_size), jnp.float32),
        "a2b": 0.1 * jax.random.normal(keys[7], (1,), jnp.float32),
        # scalar parameters, initialized as in Fsmm.__init__
        "Q": 2.9, "delta": 1.0, "R0": 1.0, "C1": 1.0, "R1": 1.0,
    }

    x = jax.random.normal(keys[8], (batch, input_size), jnp.float32)

    soc_r, loss1_r, loss2_r = _reference(x, params)

    # Single-block path (tiles cover the full batch).
    outs = fsmm_forward(x, params)
    jax.block_until_ready(outs)
    # Tiled path: 2x2 grid over the (B,B) loss2 output.
    outs_tiled = fsmm_forward(x, params, max_tile_m=128, max_tile_n=128)
    jax.block_until_ready(outs_tiled)

    for got in (outs, outs_tiled):
        soc, loss1, loss2 = got
        np.testing.assert_allclose(np.asarray(soc), np.asarray(soc_r), rtol=5e-4, atol=5e-4)
        np.testing.assert_allclose(np.asarray(loss1), np.asarray(loss1_r), rtol=5e-4, atol=5e-4)
        np.testing.assert_allclose(np.asarray(loss2), np.asarray(loss2_r), rtol=5e-4, atol=5e-4)

    print("KERNEL_OK")
</pallas_src>

<mosaic_0001>
module attributes {stable_mosaic.version = 11 : i64} {
  func.func @fsmm_kernel(%arg0: i32, %arg1: i32, %arg2: memref<7xf32, #tpu.memory_space<smem>>, %arg3: memref<256x4xf32, #tpu.memory_space<vmem>>, %arg4: memref<4x256xf32, #tpu.memory_space<vmem>>, %arg5: memref<4x256xf32, #tpu.memory_space<vmem>>, %arg6: memref<32x4xf32, #tpu.memory_space<vmem>>, %arg7: memref<4x32xf32, #tpu.memory_space<vmem>>, %arg8: memref<1x32xf32, #tpu.memory_space<vmem>>, %arg9: memref<32x1xf32, #tpu.memory_space<vmem>>, %arg10: memref<1x32xf32, #tpu.memory_space<vmem>>, %arg11: memref<32x1xf32, #tpu.memory_space<vmem>>, %arg12: memref<1x32xf32, #tpu.memory_space<vmem>>, %arg13: memref<1x256xf32, #tpu.memory_space<vmem>>, %arg14: memref<1x256xf32, #tpu.memory_space<vmem>>, %arg15: memref<256x256xf32, #tpu.memory_space<vmem>>, %arg16: memref<256x1xf32, #tpu.memory_space<vmem>>) attributes {dimension_semantics = [#tpu.dimension_semantics<parallel>, #tpu.dimension_semantics<arbitrary>], iteration_bounds = array<i64: 1, 1>, scalar_prefetch = 1 : i64, scratch_operands = 1 : i64, tpu.core_type = #tpu.core_type<tc>, window_params = [{transform_indices = @transform_0, window_bounds = array<i64: 256, 4>}, {transform_indices = @transform_1, window_bounds = array<i64: 4, 256>}, {transform_indices = @transform_2, window_bounds = array<i64: 4, 256>}, {pipeline_mode = #tpu.pipeline_mode<synchronous>, transform_indices = @transform_3, window_bounds = array<i64: 32, 4>}, {pipeline_mode = #tpu.pipeline_mode<synchronous>, transform_indices = @transform_4, window_bounds = array<i64: 4, 32>}, {pipeline_mode = #tpu.pipeline_mode<synchronous>, transform_indices = @transform_5, window_bounds = array<i64: 1, 32>}, {pipeline_mode = #tpu.pipeline_mode<synchronous>, transform_indices = @transform_6, window_bounds = array<i64: 32, 1>}, {pipeline_mode = #tpu.pipeline_mode<synchronous>, transform_indices = @transform_7, window_bounds = array<i64: 1, 32>}, {pipeline_mode = #tpu.pipeline_mode<synchronous>, transform_indices = @transform_8, window_bounds = array<i64: 32, 1>}, {pipeline_mode = #tpu.pipeline_mode<synchronous>, transform_indices = @transform_9, window_bounds = array<i64: 1, 32>}, {transform_indices = @transform_10, window_bounds = array<i64: 1, 256>}, {transform_indices = @transform_11, window_bounds = array<i64: 1, 256>}, {transform_indices = @transform_12, window_bounds = array<i64: 256, 256>}]} {
    %c0 = arith.constant 0 : index
    %0 = memref.load %arg2[%c0] : memref<7xf32, #tpu.memory_space<smem>>
    %c1 = arith.constant 1 : index
    %1 = memref.load %arg2[%c1] : memref<7xf32, #tpu.memory_space<smem>>
    %c2 = arith.constant 2 : index
    %2 = memref.load %arg2[%c2] : memref<7xf32, #tpu.memory_space<smem>>
    %c3 = arith.constant 3 : index
    %3 = memref.load %arg2[%c3] : memref<7xf32, #tpu.memory_space<smem>>
    %c4 = arith.constant 4 : index
    %4 = memref.load %arg2[%c4] : memref<7xf32, #tpu.memory_space<smem>>
    %c5 = arith.constant 5 : index
    %5 = memref.load %arg2[%c5] : memref<7xf32, #tpu.memory_space<smem>>
    %c6 = arith.constant 6 : index
    %6 = memref.load %arg2[%c6] : memref<7xf32, #tpu.memory_space<smem>>
    %c0_i32 = arith.constant 0 : i32
    %7 = arith.cmpi eq, %arg1, %c0_i32 : i32
    %8 = arith.extui %7 : i1 to i32
    %c0_i32_0 = arith.constant 0 : i32
    %9 = arith.cmpi ne, %8, %c0_i32_0 : i32
    scf.if %9 {
      %c0_17 = arith.constant 0 : index
      %c0_18 = arith.constant 0 : index
      %33 = vector.load %arg4[%c0_17, %c0_18] : memref<4x256xf32, #tpu.memory_space<vmem>>, vector<4x256xf32>
      %c0_19 = arith.constant 0 : index
      %c0_20 = arith.constant 0 : index
      %34 = vector.load %arg6[%c0_19, %c0_20] : memref<32x4xf32, #tpu.memory_space<vmem>>, vector<32x4xf32>
      %cst_21 = arith.constant dense<0.000000e+00> : vector<32x256xf32>
      %35 = tpu.matmul %34, %33, %cst_21 {dimension_numbers = #tpu.dot_dimension_numbers<[1], [0], [0], [1], [0, 0, 1, 1], [], []>} : vector<32x4xf32>, vector<4x256xf32>, vector<32x256xf32> -> vector<32x256xf32>
      %c0_22 = arith.constant 0 : index
      %c0_23 = arith.constant 0 : index
      %36 = vector.load %arg9[%c0_22, %c0_23] : memref<32x1xf32, #tpu.memory_space<vmem>>, vector<32x1xf32>
      %37 = vector.broadcast %36 : vector<32x1xf32> to vector<32x256xf32>
      %38 = arith.addf %35, %37 : vector<32x256xf32>
      %cst_24 = arith.constant 0.000000e+00 : f32
      %39 = vector.broadcast %cst_24 : f32 to vector<32x256xf32>
      %40 = arith.maximumf %38, %39 : vector<32x256xf32>
      %cst_25 = arith.constant 0.000000e+00 : f32
      %41 = vector.broadcast %cst_25 : f32 to vector<32x256xf32>
      %42 = arith.cmpf ogt, %38, %41 : vector<32x256xf32>
      %43 = arith.extui %42 : vector<32x256xi1> to vector<32x256xi32>
      %44 = arith.sitofp %43 : vector<32x256xi32> to vector<32x256xf32>
      %c0_26 = arith.constant 0 : index
      %c0_27 = arith.constant 0 : index
      %45 = vector.load %arg10[%c0_26, %c0_27] : memref<1x32xf32, #tpu.memory_space<vmem>>, vector<1x32xf32>
      %cst_28 = arith.constant dense<0.000000e+00> : vector<1x256xf32>
      %46 = tpu.matmul %45, %40, %cst_28 {dimension_numbers = #tpu.dot_dimension_numbers<[1], [0], [0], [1], [0, 0, 1, 1], [], []>} : vector<1x32xf32>, vector<32x256xf32>, vector<1x256xf32> -> vector<1x256xf32>
      %47 = vector.broadcast %6 : f32 to vector<1x256xf32>
      %48 = arith.addf %46, %47 : vector<1x256xf32>
      %c0_29 = arith.constant 0 : index
      %c0_30 = arith.constant 0 : index
      %49 = vector.load %arg12[%c0_29, %c0_30] : memref<1x32xf32, #tpu.memory_space<vmem>>, vector<1x32xf32>
      %cst_31 = arith.constant dense<0.000000e+00> : vector<1x256xf32>
      %50 = tpu.matmul %49, %44, %cst_31 {dimension_numbers = #tpu.dot_dimension_numbers<[1], [0], [0], [1], [0, 0, 1, 1], [], []>} : vector<1x32xf32>, vector<32x256xf32>, vector<1x256xf32> -> vector<1x256xf32>
      %51 = vector.extract_strided_slice %33 {offsets = [1, 0], sizes = [1, 256], strides = [1, 1]} : vector<4x256xf32> to vector<1x256xf32>
      %c0_32 = arith.constant 0 : index
      %c0_33 = arith.constant 0 : index
      %52 = vector.load %arg13[%c0_32, %c0_33] : memref<1x256xf32, #tpu.memory_space<vmem>>, vector<1x256xf32>
      tpu.vector_store %arg13[%c0_32, %c0_33], %48 {strides = array<i32>} : memref<1x256xf32, #tpu.memory_space<vmem>>, vector<1x256xf32>,
      %53 = vector.broadcast %0 : f32 to vector<1x256xf32>
      %54 = arith.mulf %53, %51 : vector<1x256xf32>
      %55 = arith.addf %54, %50 : vector<1x256xf32>
      %c0_34 = arith.constant 0 : index
      %c0_35 = arith.constant 0 : index
      %56 = vector.load %arg14[%c0_34, %c0_35] : memref<1x256xf32, #tpu.memory_space<vmem>>, vector<1x256xf32>
      tpu.vector_store %arg14[%c0_34, %c0_35], %55 {strides = array<i32>} : memref<1x256xf32, #tpu.memory_space<vmem>>, vector<1x256xf32>,
      %c0_36 = arith.constant 0 : index
      %c0_37 = arith.constant 0 : index
      %57 = vector.load %arg3[%c0_36, %c0_37] : memref<256x4xf32, #tpu.memory_space<vmem>>, vector<256x4xf32>
      %c0_38 = arith.constant 0 : index
      %c0_39 = arith.constant 0 : index
      %58 = vector.load %arg7[%c0_38, %c0_39] : memref<4x32xf32, #tpu.memory_space<vmem>>, vector<4x32xf32>
      %cst_40 = arith.constant dense<0.000000e+00> : vector<256x32xf32>
      %59 = tpu.matmul %57, %58, %cst_40 {dimension_numbers = #tpu.dot_dimension_numbers<[1], [0], [0], [1], [0, 0, 1, 1], [], []>} : vector<256x4xf32>, vector<4x32xf32>, vector<256x32xf32> -> vector<256x32xf32>
      %c0_41 = arith.constant 0 : index
      %c0_42 = arith.constant 0 : index
      %60 = vector.load %arg8[%c0_41, %c0_42] : memref<1x32xf32, #tpu.memory_space<vmem>>, vector<1x32xf32>
      %61 = vector.broadcast %60 : vector<1x32xf32> to vector<256x32xf32>
      %62 = arith.addf %59, %61 : vector<256x32xf32>
      %cst_43 = arith.constant 0.000000e+00 : f32
      %63 = vector.broadcast %cst_43 : f32 to vector<256x32xf32>
      %64 = arith.maximumf %62, %63 : vector<256x32xf32>
      %c0_44 = arith.constant 0 : index
      %c0_45 = arith.constant 0 : index
      %65 = vector.load %arg11[%c0_44, %c0_45] : memref<32x1xf32, #tpu.memory_space<vmem>>, vector<32x1xf32>
      %cst_46 = arith.constant dense<0.000000e+00> : vector<256x1xf32>
      %66 = tpu.matmul %64, %65, %cst_46 {dimension_numbers = #tpu.dot_dimension_numbers<[1], [0], [0], [1], [0, 0, 1, 1], [], []>} : vector<256x32xf32>, vector<32x1xf32>, vector<256x1xf32> -> vector<256x1xf32>
      %67 = vector.broadcast %6 : f32 to vector<256x1xf32>
      %68 = arith.addf %66, %67 : vector<256x1xf32>
      %69 = vector.extract_strided_slice %57 {offsets = [0, 0], sizes = [256, 1], strides = [1, 1]} : vector<256x4xf32> to vector<256x1xf32>
      %70 = vector.extract_strided_slice %57 {offsets = [0, 1], sizes = [256, 1], strides = [1, 1]} : vector<256x4xf32> to vector<256x1xf32>
      %71 = vector.broadcast %1 : f32 to vector<256x1xf32>
      %72 = arith.mulf %71, %68 : vector<256x1xf32>
      %73 = vector.broadcast %2 : f32 to vector<256x1xf32>
      %74 = arith.addf %72, %73 : vector<256x1xf32>
      %75 = arith.subf %69, %74 : vector<256x1xf32>
      %76 = vector.broadcast %3 : f32 to vector<256x1xf32>
      %77 = arith.mulf %76, %70 : vector<256x1xf32>
      %78 = arith.subf %75, %77 : vector<256x1xf32>
      %79 = vector.broadcast %4 : f32 to vector<256x1xf32>
      %80 = arith.mulf %79, %78 : vector<256x1xf32>
      %81 = vector.broadcast %5 : f32 to vector<256x1xf32>
      %82 = arith.mulf %81, %70 : vector<256x1xf32>
      %83 = arith.subf %80, %82 : vector<256x1xf32>
      %c0_47 = arith.constant 0 : index
      %c0_48 = arith.constant 0 : index
      %84 = vector.load %arg16[%c0_47, %c0_48] : memref<256x1xf32, #tpu.memory_space<vmem>>, vector<256x1xf32>
      tpu.vector_store %arg16[%c0_47, %c0_48], %83 {strides = array<i32>} : memref<256x1xf32, #tpu.memory_space<vmem>>, vector<256x1xf32>,
    } else {
    }
    %c0_1 = arith.constant 0 : index
    %c0_2 = arith.constant 0 : index
    %10 = vector.load %arg5[%c0_1, %c0_2] : memref<4x256xf32, #tpu.memory_space<vmem>>, vector<4x256xf32>
    %c0_3 = arith.constant 0 : index
    %c0_4 = arith.constant 0 : index
    %11 = vector.load %arg6[%c0_3, %c0_4] : memref<32x4xf32, #tpu.memory_space<vmem>>, vector<32x4xf32>
    %cst = arith.constant dense<0.000000e+00> : vector<32x256xf32>
    %12 = tpu.matmul %11, %10, %cst {dimension_numbers = #tpu.dot_dimension_numbers<[1], [0], [0], [1], [0, 0, 1, 1], [], []>} : vector<32x4xf32>, vector<4x256xf32>, vector<32x256xf32> -> vector<32x256xf32>
    %c0_5 = arith.constant 0 : index
    %c0_6 = arith.constant 0 : index
    %13 = vector.load %arg9[%c0_5, %c0_6] : memref<32x1xf32, #tpu.memory_space<vmem>>, vector<32x1xf32>
    %14 = vector.broadcast %13 : vector<32x1xf32> to vector<32x256xf32>
    %15 = arith.addf %12, %14 : vector<32x256xf32>
    %cst_7 = arith.constant 0.000000e+00 : f32
    %16 = vector.broadcast %cst_7 : f32 to vector<32x256xf32>
    %17 = arith.cmpf ogt, %15, %16 : vector<32x256xf32>
    %18 = arith.extui %17 : vector<32x256xi1> to vector<32x256xi32>
    %19 = arith.sitofp %18 : vector<32x256xi32> to vector<32x256xf32>
    %c0_8 = arith.constant 0 : index
    %c0_9 = arith.constant 0 : index
    %20 = vector.load %arg12[%c0_8, %c0_9] : memref<1x32xf32, #tpu.memory_space<vmem>>, vector<1x32xf32>
    %cst_10 = arith.constant dense<0.000000e+00> : vector<1x256xf32>
    %21 = tpu.matmul %20, %19, %cst_10 {dimension_numbers = #tpu.dot_dimension_numbers<[1], [0], [0], [1], [0, 0, 1, 1], [], []>} : vector<1x32xf32>, vector<32x256xf32>, vector<1x256xf32> -> vector<1x256xf32>
    %cst_11 = arith.constant 0.000000e+00 : f32
    %22 = arith.mulf %3, %cst_11 : f32
    %cst_12 = arith.constant 0.000000e+00 : f32
    %23 = arith.subf %cst_12, %22 : f32
    %24 = vector.broadcast %1 : f32 to vector<1x256xf32>
    %25 = arith.mulf %24, %21 : vector<1x256xf32>
    %26 = vector.broadcast %23 : f32 to vector<1x256xf32>
    %27 = arith.subf %26, %25 : vector<1x256xf32>
    %c0_13 = arith.constant 0 : index
    %c0_14 = arith.constant 0 : index
    %28 = vector.load %arg16[%c0_13, %c0_14] : memref<256x1xf32, #tpu.memory_space<vmem>>, vector<256x1xf32>
    %29 = vector.broadcast %28 : vector<256x1xf32> to vector<256x256xf32>
    %30 = vector.broadcast %27 : vector<1x256xf32> to vector<256x256xf32>
    %31 = arith.addf %29, %30 : vector<256x256xf32>
    %c0_15 = arith.constant 0 : index
    %c0_16 = arith.constant 0 : index
    %32 = vector.load %arg15[%c0_15, %c0_16] : memref<256x256xf32, #tpu.memory_space<vmem>>, vector<256x256xf32>
    tpu.vector_store %arg15[%c0_15, %c0_16], %31 {strides = array<i32>} : memref<256x256xf32, #tpu.memory_space<vmem>>, vector<256x256xf32>,
    return
  }
  func.func @transform_0(%arg0: i32, %arg1: i32, %arg2: memref<7xf32, #tpu.memory_space<smem>>) -> (i32, i32) {
    %c0_i32 = arith.constant 0 : i32
    %c0_i32_0 = arith.constant 0 : i32
    return %arg0, %c0_i32 : i32, i32
  }
  func.func @transform_1(%arg0: i32, %arg1: i32, %arg2: memref<7xf32, #tpu.memory_space<smem>>) -> (i32, i32) {
    %c0_i32 = arith.constant 0 : i32
    %c0_i32_0 = arith.constant 0 : i32
    return %c0_i32, %arg0 : i32, i32
  }
  func.func @transform_2(%arg0: i32, %arg1: i32, %arg2: memref<7xf32, #tpu.memory_space<smem>>) -> (i32, i32) {
    %c0_i32 = arith.constant 0 : i32
    %c0_i32_0 = arith.constant 0 : i32
    return %c0_i32, %arg1 : i32, i32
  }
  func.func @transform_3(%arg0: i32, %arg1: i32, %arg2: memref<7xf32, #tpu.memory_space<smem>>) -> (i32, i32) {
    %c0_i32 = arith.constant 0 : i32
    %c0_i32_0 = arith.constant 0 : i32
    %c0_i32_1 = arith.constant 0 : i32
    return %c0_i32, %c0_i32_0 : i32, i32
  }
  func.func @transform_4(%arg0: i32, %arg1: i32, %arg2: memref<7xf32, #tpu.memory_space<smem>>) -> (i32, i32) {
    %c0_i32 = arith.constant 0 : i32
    %c0_i32_0 = arith.constant 0 : i32
    %c0_i32_1 = arith.constant 0 : i32
    return %c0_i32, %c0_i32_0 : i32, i32
  }
  func.func @transform_5(%arg0: i32, %arg1: i32, %arg2: memref<7xf32, #tpu.memory_space<smem>>) -> (i32, i32) {
    %c0_i32 = arith.constant 0 : i32
    %c0_i32_0 = arith.constant 0 : i32
    %c0_i32_1 = arith.constant 0 : i32
    return %c0_i32, %c0_i32_0 : i32, i32
  }
  func.func @transform_6(%arg0: i32, %arg1: i32, %arg2: memref<7xf32, #tpu.memory_space<smem>>) -> (i32, i32) {
    %c0_i32 = arith.constant 0 : i32
    %c0_i32_0 = arith.constant 0 : i32
    %c0_i32_1 = arith.constant 0 : i32
    return %c0_i32, %c0_i32_0 : i32, i32
  }
  func.func @transform_7(%arg0: i32, %arg1: i32, %arg2: memref<7xf32, #tpu.memory_space<smem>>) -> (i32, i32) {
    %c0_i32 = arith.constant 0 : i32
    %c0_i32_0 = arith.constant 0 : i32
    %c0_i32_1 = arith.constant 0 : i32
    return %c0_i32, %c0_i32_0 : i32, i32
  }
  func.func @transform_8(%arg0: i32, %arg1: i32, %arg2: memref<7xf32, #tpu.memory_space<smem>>) -> (i32, i32) {
    %c0_i32 = arith.constant 0 : i32
    %c0_i32_0 = arith.constant 0 : i32
    %c0_i32_1 = arith.constant 0 : i32
    return %c0_i32, %c0_i32_0 : i32, i32
  }
  func.func @transform_9(%arg0: i32, %arg1: i32, %arg2: memref<7xf32, #tpu.memory_space<smem>>) -> (i32, i32) {
    %c0_i32 = arith.constant 0 : i32
    %c0_i32_0 = arith.constant 0 : i32
    %c0_i32_1 = arith.constant 0 : i32
    return %c0_i32, %c0_i32_0 : i32, i32
  }
  func.func @transform_10(%arg0: i32, %arg1: i32, %arg2: memref<7xf32, #tpu.memory_space<smem>>) -> (i32, i32) {
    %c0_i32 = arith.constant 0 : i32
    %c0_i32_0 = arith.constant 0 : i32
    return %c0_i32, %arg0 : i32, i32
  }
  func.func @transform_11(%arg0: i32, %arg1: i32, %arg2: memref<7xf32, #tpu.memory_space<smem>>) -> (i32, i32) {
    %c0_i32 = arith.constant 0 : i32
    %c0_i32_0 = arith.constant 0 : i32
    return %c0_i32, %arg0 : i32, i32
  }
  func.func @transform_12(%arg0: i32, %arg1: i32, %arg2: memref<7xf32, #tpu.memory_space<smem>>) -> (i32, i32) {
    %c0_i32 = arith.constant 0 : i32
    return %arg0, %arg1 : i32, i32
  }
}

</mosaic_0001>

<bundles_post_ra>
// kernel: tpu_custom_call.1
= control target key start
LH: loop header
LB: loop body
LE: loop exit
PB: predicated region body
PF: predicated region fallthrough
CT: control target
= control target key end

     0   :  { %s4058_s0 = inlined_call_operand.vmem [shape: f32[7], index: 0, kind: input, shape index: {}]   ;;  %s4059_s1 = inlined_call_operand.vmem [shape: f32[256,4], index: 1, kind: input, shape index: {}]   ;;  %s4060_s2 = inlined_call_operand.vmem [shape: f32[4,256], index: 2, kind: input, shape index: {}]   ;;  %s4061_s3 = inlined_call_operand.vmem [shape: f32[4,256], index: 3, kind: input, shape index: {}]   ;;  %s4062_s4 = inlined_call_operand.vmem [shape: f32[32,4], index: 4, kind: input, shape index: {}]   ;;  %s4063_s5 = inlined_call_operand.vmem [shape: f32[4,32], index: 5, kind: input, shape index: {}]   ;;  %s4064_s6 = inlined_call_operand.vmem [shape: f32[1,32], index: 6, kind: input, shape index: {}]   ;;  %s4065_s7 = inlined_call_operand.vmem [shape: f32[32,1], index: 7, kind: input, shape index: {}]   ;;  %s4066_s8 = inlined_call_operand.vmem [shape: f32[1,32], index: 8, kind: input, shape index: {}]   ;;  %s4067_s9 = inlined_call_operand.vmem [shape: f32[32,1], index: 9, kind: input, shape index: {}]   ;;  %s4068_s10 = inlined_call_operand.vmem [shape: f32[1,32], index: 10, kind: input, shape index: {}]   ;;  %s4069_s11 = inlined_call_operand.hbm [shape: f32[1,256], index: 11, kind: output, shape index: {0}]   ;;  %s4070_s12 = inlined_call_operand.hbm [shape: f32[1,256], index: 12, kind: output, shape index: {1}]   ;;  %s4071_s13 = inlined_call_operand.hbm [shape: f32[256,256], index: 13, kind: output, shape index: {2}]  }
   0x1   :  { %s19_s27 = sshll.u32 %s4058_s0, 4  ;;  %s20_s27 = int_to_ptr.vmem [resolvable:$true] %s19_s27 }
   0x2   :  { %s2691_s28 = scalar_lea.vmem %s20_s27, 16  ;;  %p2696_p1 = scmp.lt.s32.totalorder %s20_s27, %s20_s27 }
   0x3   :  { %p2692_p0 = scmp.ne.s32.totalorder %s20_s27, %s2691_s28  ;;  %p2697_p2 = scmp.lt.s32.totalorder %s2691_s28, %s2691_s28 }
   0x5   :  { %p2698_p3 = por %p2697_p2, %p2696_p1 }
   0x7   :  { %p2699_p4 = pnand %p2698_p3, %p2692_p0 }
   0x9   :  { %2702 = shalt.err (!%p2699_p4)  }
   0xa   :  { %s2775_s29 = smov [#allocation4]  }
   0xb   :  { %22 = dma.vmem_to_smem %s20_s27, 16, %s2775_s29, [#allocation3] }
   0xc   :  { %2769 = dma.done.wait [#allocation3], 16 }
   0xd   :  { %2770 = vsyncadd [#allocation3], 4294967280 }
   0xe   :  { %24 = sfence }
   0xf   :  { %25 = vsyncpa [#allocation6], 0  ;;  %v58_v0 = vld [vmem:[%s4060_s2] sm:$0xff]  ;;  %vm102_vm0 = vcmask 1043456   ;;  %v2776_v2 = vmov 0.0   ;;  %vm89_vm1 = vcmask 31744  }
  0x10   :  { %v88_v1 = vcombine.high %v58_v0, %v58_v0  ;;  %171 = vmatprep.mubr.f32.mxu0 %v2776_v2  ;;  %298 = vmatprep.mubr.f32.mxu1 %v2776_v2  ;;  %v2867_v3 = vld [vmem:[%s4062_s4] sm:$0xff]  ;;  %v2777_v5 = vmov 0   ;;  %v2881_v6 = vld [vmem:[%s4062_s4 + $0x8] sm:$0xff]  ;;  %v2890_v7 = vld [vmem:[%s4062_s4 + $0x10] sm:$0xff] }
  0x11   :  { %v461_v4 = vld [vmem:[%s4063_s5] sm:$0xf]  ;;  %2654 = vset.pattern.permute.xlu0 %v2777_v5  ;;  %2655 = vset.pattern.permute.xlu1 %v2777_v5  ;;  %v65_v10 = vld [vmem:[%s4065_s7 + $0x10] sm:$0xff]  ;;  %v2907_v11 = vld [vmem:[%s4062_s4 + $0x18] sm:$0xff] }
  0x12   :  { %2323 = vmatprep.subr.msk.mxu0 %vm102_vm0, %v88_v1  ;;  %v63_v8 = vld [vmem:[%s4065_s7] sm:$0xff]  ;;  %79 = vperm.xlu1 %2655, %v65_v10   ;;  %v64_v13 = vld [vmem:[%s4065_s7 + $0x8] sm:$0xff] }
  0x13   :  { %2324 = vmatpush1.msk.msra.mxu0 %vm102_vm0, %v58_v0  ;;  %69 = vperm.xlu0 %2654, %v63_v8   ;;  %v1700_v9 = vld [vmem:[%s4061_s3] sm:$0xff] }
  0x14   :  { %2325 = vmatmul.mubr.msk.f32.vlgmr.msra.gmra.mrb[0].mxu0 %vm89_vm1, %v2867_v3  ;;  %2505 = vmatprep.subr.msk.mxu0 %vm102_vm0, %v461_v4  ;;  %v1730_v12 = vcombine.high %v1700_v9, %v1700_v9 }
  0x15   :  { %177 = vmatprep.mubr.f32.mxu0 %v2776_v2  ;;  %2506 = vmatpush3.msk.msra.mxu0 %vm102_vm0, %v461_v4 }
  0x18   :  { %2326 = vmatmul.mubr.msk.f32.gmra.mrb[2].mxu0 %vm89_vm1, %v2881_v6 }
  0x19   :  { %183 = vmatprep.mubr.f32.mxu0 %v2776_v2 }
  0x1c   :  { %2327 = vmatmul.mubr.msk.f32.gmra.mrb[4].mxu0 %vm89_vm1, %v2890_v7 }
  0x1d   :  { %189 = vmatprep.mubr.f32.mxu0 %v2776_v2 }
  0x1e   :  { %26 = vsyncpa [#allocation8], 0  ;;  %v2915_v14 = vld [vmem:[%s4059_s1] sm:$0xff]  ;;  %v66_v15 = vld [vmem:[%s4065_s7 + $0x18] sm:$0xff]  ;;  %2413 = vmatprep.subr.msk.mxu0 %vm102_vm0, %v1730_v12  ;;  %74 = vperm.xlu0 %2654, %v64_v13   ;;  %s3155_s14 = sld [smem:[#allocation4 + $0x3]]  ;;  %s2778_s3 = smov 127  }
  0x1f   :  { %v2928_v16 = vld [vmem:[%s4059_s1 + $0x8] sm:$0xff]  ;;  %84 = vperm.xlu1 %2655, %v66_v15   ;;  %v2933_v17 = vld [vmem:[%s4059_s1 + $0x10] sm:$0xff]  ;;  %v2942_v18 = vld [vmem:[%s4059_s1 + $0x18] sm:$0xff]  ;;  %s3242_s0 = sld [smem:[#allocation4 + $0x5]]  ;;  %vm230_vm14 = vcmask 261120   ;;  %s47_s25 = sld [smem:[#allocation4]] }
  0x20   :  { %2328 = vmatmul.mubr.msk.f32.gmra.mrb[6].mxu0 %vm89_vm1, %v2907_v11  ;;  %v2948_v19 = vld [vmem:[%s4059_s1 + $0x20] sm:$0xff]  ;;  %v2957_v20 = vld [vmem:[%s4059_s1 + $0x28] sm:$0xff]  ;;  %v2962_v21 = vld [vmem:[%s4059_s1 + $0x30] sm:$0xff]  ;;  %s2317_s26 = sld [smem:[#allocation4 + $0x1]]  ;;  %s2318_s29 = sld [smem:[#allocation4 + $0x2]] }
  0x21   :  { %2507 = vmatprep.mubr.msk.f32.mxu0 %vm89_vm1, %v2915_v14  ;;  %v2971_v22 = vld [vmem:[%s4059_s1 + $0x38] sm:$0xff]  ;;  %v2976_v23 = vld [vmem:[%s4059_s1 + $0x40] sm:$0xff]  ;;  %v2985_v24 = vld [vmem:[%s4059_s1 + $0x48] sm:$0xff]  ;;  %s2320_s30 = sld [smem:[#allocation4 + $0x4]]  ;;  %s2782_s20 = smov [#allocation5]  }
  0x22   :  { %1711 = vperm.xlu0 %2654, %v63_v8   ;;  %v2990_v25 = vld [vmem:[%s4059_s1 + $0x50] sm:$0xff]  ;;  %v2999_v26 = vld [vmem:[%s4059_s1 + $0x58] sm:$0xff]  ;;  %v3004_v27 = vld [vmem:[%s4059_s1 + $0x60] sm:$0xff]  ;;  %s2280_s21 = sshll.u32 %s2782_s20, 4  ;;  %s2281_s21 = int_to_ptr.vmem [resolvable:$true] %s2280_s21 }
  0x23   :  { %1716 = vperm.xlu1 %2655, %v64_v13   ;;  %v3013_v28 = vld [vmem:[%s4059_s1 + $0x68] sm:$0xff]  ;;  %v3018_v29 = vld [vmem:[%s4059_s1 + $0x70] sm:$0xff]  ;;  %v3027_v30 = vld [vmem:[%s4059_s1 + $0x78] sm:$0xff] }
  0x24   :  { %2508 = vmatmul.mubr.msk.f32.vlgmr.msra.gmra.mrb[8].mxu0 %vm89_vm1, %v2928_v16  ;;  %v3032_v31 = vld [vmem:[%s4059_s1 + $0x80] sm:$0xff]  ;;  %v3041_v32 = vld [vmem:[%s4059_s1 + $0x88] sm:$0xff]  ;;  %v3046_v33 = vld [vmem:[%s4059_s1 + $0x90] sm:$0xff]  ;;  %v3158_v47 = vstv %s3155_s14 }
  0x25   :  { %2510 = vmatprep.mubr.msk.f32.mxu0 %vm89_vm1, %v2933_v17  ;;  %2414 = vmatpush1.msk.msra.mxu0 %vm102_vm0, %v1700_v9  ;;  %v3055_v34 = vld [vmem:[%s4059_s1 + $0x98] sm:$0xff]  ;;  %v3060_v35 = vld [vmem:[%s4059_s1 + $0xa0] sm:$0xff]  ;;  %v3069_v36 = vld [vmem:[%s4059_s1 + $0xa8] sm:$0xff]  ;;  %v1250_v48 = vmul.f32 %v3158_v47, %v2928_v16  ;;  %v1249_v49 = vmul.f32 %v3158_v47, %v2915_v14  ;;  %v1252_v50 = vmul.f32 %v3158_v47, %v2942_v18 }
  0x26   :  { %1721 = vperm.xlu0 %2654, %v65_v10   ;;  %v3074_v37 = vld [vmem:[%s4059_s1 + $0xb0] sm:$0xff]  ;;  %v3083_v38 = vld [vmem:[%s4059_s1 + $0xb8] sm:$0xff]  ;;  %v3088_v39 = vld [vmem:[%s4059_s1 + $0xc0] sm:$0xff]  ;;  %v1251_v51 = vmul.f32 %v3158_v47, %v2933_v17  ;;  %v1254_v52 = vmul.f32 %v3158_v47, %v2957_v20  ;;  %v1253_v53 = vmul.f32 %v3158_v47, %v2948_v19  ;;  %v1256_v54 = vmul.f32 %v3158_v47, %v2971_v22 }
  0x27   :  { %1726 = vperm.xlu1 %2655, %v66_v15   ;;  %v3097_v40 = vld [vmem:[%s4059_s1 + $0xc8] sm:$0xff]  ;;  %v3102_v41 = vld [vmem:[%s4059_s1 + $0xd0] sm:$0xff]  ;;  %v3111_v42 = vld [vmem:[%s4059_s1 + $0xd8] sm:$0xff]  ;;  %v1255_v55 = vmul.f32 %v3158_v47, %v2962_v21  ;;  %v1258_v56 = vmul.f32 %v3158_v47, %v2985_v24  ;;  %v1257_v57 = vmul.f32 %v3158_v47, %v2976_v23  ;;  %v1260_v58 = vmul.f32 %v3158_v47, %v2999_v26 }
  0x28   :  { %2511 = vmatmul.mubr.msk.f32.gmra.mrb[10].mxu0 %vm89_vm1, %v2942_v18  ;;  %v3116_v43 = vld [vmem:[%s4059_s1 + $0xe0] sm:$0xff]  ;;  %v3125_v44 = vld [vmem:[%s4059_s1 + $0xe8] sm:$0xff]  ;;  %v3130_v45 = vld [vmem:[%s4059_s1 + $0xf0] sm:$0xff]  ;;  %v1259_v59 = vmul.f32 %v3158_v47, %v2990_v25  ;;  %v1262_v60 = vmul.f32 %v3158_v47, %v3013_v28  ;;  %v1261_v61 = vmul.f32 %v3158_v47, %v3004_v27  ;;  %v1264_v62 = vmul.f32 %v3158_v47, %v3027_v30 }
  0x29   :  { %2513 = vmatprep.mubr.msk.f32.mxu0 %vm89_vm1, %v2948_v19  ;;  %v3139_v46 = vld [vmem:[%s4059_s1 + $0xf8] sm:$0xff]  ;;  %v1263_v63 = vmul.f32 %v3158_v47, %v3018_v29  ;;  %v1266_v0 = vmul.f32 %v3158_v47, %v3041_v32  ;;  %v1265_v1 = vmul.f32 %v3158_v47, %v3032_v31  ;;  %v1267_v4 = vmul.f32 %v3158_v47, %v3046_v33 }
  0x2a   :  { %1313 = vrot.lane.b32.xlu0 %v1249_v49, %s2778_s3  ;;  %v1270_v5 = vmul.f32 %v3158_v47, %v3069_v36  ;;  %v1271_v9 = vmul.f32 %v3158_v47, %v3074_v37  ;;  %v1274_v12 = vmul.f32 %v3158_v47, %v3097_v40  ;;  %v1273_v13 = vmul.f32 %v3158_v47, %v3088_v39 }
  0x2b   :  { %1315 = vrot.lane.b32.xlu1 %v1250_v48, %s2778_s3 }
  0x2c   :  { %2514 = vmatmul.mubr.msk.f32.gmra.mrb[12].mxu0 %vm89_vm1, %v2957_v20 }
  0x2d   :  { %2516 = vmatprep.mubr.msk.f32.mxu0 %vm89_vm1, %v2962_v21 }
  0x2e   :  { %1317 = vrot.lane.b32.xlu0 %v1251_v51, %s2778_s3 }
  0x2f   :  { %1319 = vrot.lane.b32.xlu1 %v1252_v50, %s2778_s3 }
  0x30   :  { %2517 = vmatmul.mubr.msk.f32.gmra.mrb[14].mxu0 %vm89_vm1, %v2971_v22 }
  0x31   :  { %2519 = vmatprep.mubr.msk.f32.mxu0 %vm89_vm1, %v2976_v23 }
  0x32   :  { %1321 = vrot.lane.b32.xlu0 %v1253_v53, %s2778_s3  ;;  %v1276_v53 = vmul.f32 %v3158_v47, %v3111_v42 }
  0x33   :  { %1323 = vrot.lane.b32.xlu1 %v1254_v52, %s2778_s3 }
  0x34   :  { %2520 = vmatmul.mubr.msk.f32.gmra.mrb[16].mxu0 %vm89_vm1, %v2985_v24 }
  0x35   :  { %2522 = vmatprep.mubr.msk.f32.mxu0 %vm89_vm1, %v2990_v25 }
  0x36   :  { %1325 = vrot.lane.b32.xlu0 %v1255_v55, %s2778_s3 }
  0x37   :  { %1327 = vrot.lane.b32.xlu1 %v1256_v54, %s2778_s3 }
  0x38   :  { %2523 = vmatmul.mubr.msk.f32.gmra.mrb[18].mxu0 %vm89_vm1, %v2999_v26 }
  0x39   :  { %2525 = vmatprep.mubr.msk.f32.mxu0 %vm89_vm1, %v3004_v27 }
  0x3a   :  { %1329 = vrot.lane.b32.xlu0 %v1257_v57, %s2778_s3 }
  0x3b   :  { %1331 = vrot.lane.b32.xlu1 %v1258_v56, %s2778_s3  ;;  %v1275_v56 = vmul.f32 %v3158_v47, %v3102_v41 }
  0x3c   :  { %2526 = vmatmul.mubr.msk.f32.gmra.mrb[20].mxu0 %vm89_vm1, %v3013_v28 }
  0x3d   :  { %2528 = vmatprep.mubr.msk.f32.mxu0 %vm89_vm1, %v3018_v29 }
  0x3e   :  { %1333 = vrot.lane.b32.xlu0 %v1259_v59, %s2778_s3  ;;  %v827_v59 = vld [vmem:[%s4067_s9 + $0x10] sm:$0xff] }
  0x3f   :  { %1335 = vrot.lane.b32.xlu1 %v1260_v58, %s2778_s3 }
  0x40   :  { %2529 = vmatmul.mubr.msk.f32.gmra.mrb[22].mxu0 %vm89_vm1, %v3027_v30 }
  0x41   :  { %2531 = vmatprep.mubr.msk.f32.mxu0 %vm89_vm1, %v3032_v31 }
  0x42   :  { %1337 = vrot.lane.b32.xlu0 %v1261_v61, %s2778_s3 }
  0x43   :  { %1339 = vrot.lane.b32.xlu1 %v1262_v60, %s2778_s3 }
  0x44   :  { %2532 = vmatmul.mubr.msk.f32.gmra.mrb[24].mxu0 %vm89_vm1, %v3041_v32 }
  0x45   :  { %2534 = vmatprep.mubr.msk.f32.mxu0 %vm89_vm1, %v3046_v33 }
  0x46   :  { %1341 = vrot.lane.b32.xlu0 %v1263_v63, %s2778_s3 }
  0x47   :  { %1343 = vrot.lane.b32.xlu1 %v1264_v62, %s2778_s3 }
  0x48   :  { %2535 = vmatmul.mubr.msk.f32.gmra.mrb[26].mxu0 %vm89_vm1, %v3055_v34 }
  0x49   :  { %2537 = vmatprep.mubr.msk.f32.mxu0 %vm89_vm1, %v3060_v35 }
  0x4a   :  { %1345 = vrot.lane.b32.xlu0 %v1265_v1, %s2778_s3 }
  0x4b   :  { %1347 = vrot.lane.b32.xlu1 %v1266_v0, %s2778_s3 }
  0x4c   :  { %2538 = vmatmul.mubr.msk.f32.gmra.mrb[28].mxu0 %vm89_vm1, %v3069_v36 }
  0x4d   :  { %2540 = vmatprep.mubr.msk.f32.mxu0 %vm89_vm1, %v3074_v37 }
  0x4e   :  { %1349 = vrot.lane.b32.xlu0 %v1267_v4, %s2778_s3 }
  0x50   :  { %2541 = vmatmul.mubr.msk.f32.gmra.mrb[30].mxu0 %vm89_vm1, %v3083_v38 }
  0x51   :  { %2543 = vmatprep.mubr.msk.f32.mxu0 %vm89_vm1, %v3088_v39 }
  0x54   :  { %2544 = vmatmul.mubr.msk.f32.gmra.mrb[32].mxu0 %vm89_vm1, %v3097_v40 }
  0x55   :  { %2546 = vmatprep.mubr.msk.f32.mxu0 %vm89_vm1, %v3102_v41 }
  0x58   :  { %2547 = vmatmul.mubr.msk.f32.gmra.mrb[34].mxu0 %vm89_vm1, %v3111_v42 }
  0x59   :  { %2549 = vmatprep.mubr.msk.f32.mxu0 %vm89_vm1, %v3116_v43 }
  0x5c   :  { %2550 = vmatmul.mubr.msk.f32.gmra.mrb[36].mxu0 %vm89_vm1, %v3125_v44 }
  0x5d   :  { %2552 = vmatprep.mubr.msk.f32.mxu0 %vm89_vm1, %v3130_v45 }
  0x60   :  { %2553 = vmatmul.mubr.msk.f32.gmra.mrb[38].mxu0 %vm89_vm1, %v3139_v46 }
  0x61   :  { %1813 = vmatprep.mubr.f32.mxu0 %v2776_v2 }
  0x64   :  { %2415 = vmatmul.mubr.msk.f32.vlgmr.msra.gmra.mrb[40].mxu0 %vm89_vm1, %v2867_v3  ;;  %v1268_v3 = vmul.f32 %v3158_v47, %v3055_v34 }
  0x65   :  { %1819 = vmatprep.mubr.f32.mxu0 %v2776_v2 }
  0x66   :  { %1351 = vrot.lane.b32.xlu1 %v1268_v3, %s2778_s3  ;;  %v1278_v3 = vmul.f32 %v3158_v47, %v3125_v44 }
  0x68   :  { %2416 = vmatmul.mubr.msk.f32.gmra.mrb[42].mxu0 %vm89_vm1, %v2881_v6  ;;  %v1269_v6 = vmul.f32 %v3158_v47, %v3060_v35 }
  0x69   :  { %1825 = vmatprep.mubr.f32.mxu0 %v2776_v2 }
  0x6a   :  { %1355 = vrot.lane.b32.xlu1 %v1270_v5, %s2778_s3  ;;  %1353 = vrot.lane.b32.xlu0 %v1269_v6, %s2778_s3  ;;  %v1277_v5 = vmul.f32 %v3158_v47, %v3116_v43 }
  0x6c   :  { %2417 = vmatmul.mubr.msk.f32.gmra.mrb[44].mxu0 %vm89_vm1, %v2890_v7  ;;  %v1272_v7 = vmul.f32 %v3158_v47, %v3083_v38 }
  0x6d   :  { %1831 = vmatprep.mubr.f32.mxu0 %v2776_v2 }
  0x6e   :  { %1359 = vrot.lane.b32.xlu1 %v1272_v7, %s2778_s3  ;;  %1357 = vrot.lane.b32.xlu0 %v1271_v9, %s2778_s3 }
  0x70   :  { %2418 = vmatmul.mubr.msk.f32.gmra.mrb[46].mxu0 %vm89_vm1, %v2907_v11 }
  0x72   :  { %1363 = vrot.lane.b32.xlu1 %v1274_v12, %s2778_s3  ;;  %1361 = vrot.lane.b32.xlu0 %v1273_v13, %s2778_s3  ;;  %v1280_v12 = vmul.f32 %v3158_v47, %v3139_v46 }
  0x76   :  { %1367 = vrot.lane.b32.xlu1 %v1276_v53, %s2778_s3  ;;  %1365 = vrot.lane.b32.xlu0 %v1275_v56, %s2778_s3 }
  0x7a   :  { %1371 = vrot.lane.b32.xlu1 %v1278_v3, %s2778_s3  ;;  %1369 = vrot.lane.b32.xlu0 %v1277_v5, %s2778_s3  ;;  %v825_v3 = vld [vmem:[%s4067_s9] sm:$0xff] }
  0x7e   :  { %1375 = vrot.lane.b32.xlu1 %v1280_v12, %s2778_s3 }
  0x91   :  { %v80_v54 = vpop.permute.xlu1 %79 }
  0x92   :  { %v70_v8 = vpop.permute.xlu0 %69 }
  0x9d   :  { %v75_v48 = vpop.permute.xlu0 %74 }
  0x9e   :  { %v85_v7 = vpop.permute.xlu1 %84 }
  0xe7   :  { %v173_v10 = vpop.f32.mrb[0].mxu0 }
  0xe8   :  { %v175_v11 = vpop.f32.mrb[1].mxu0  ;;  %v174_v15 = vadd.f32 %v173_v10, %v70_v8 }
  0xe9   :  { %v176_v49 = vadd.f32 %v175_v11, %v70_v8 }
  0xea   :  { %v196_v57 = vmax.f32 %v174_v15, 0.0  ;;  %vm204_vm2 = vcmp.gt.f32.partialorder %v174_v15, 0.0  ;;  %v1279_v15 = vmul.f32 %v3158_v47, %v3130_v45 }
  0xeb   :  { %v179_v50 = vpop.f32.mrb[2].mxu0  ;;  %vm205_vm4 = vcmp.gt.f32.partialorder %v176_v49, 0.0  ;;  %v197_v61 = vmax.f32 %v176_v49, 0.0 }
  0xec   :  { %v180_v51 = vadd.f32 %v179_v50, %v75_v48  ;;  %v181_v52 = vpop.f32.mrb[3].mxu0  ;;  %1373 = vrot.lane.b32.xlu0 %v1279_v15, %s2778_s3 }
  0xed   :  { %v182_v55 = vadd.f32 %v181_v52, %v75_v48  ;;  %v3265_v48 = vstv %s3242_s0 }
  0xee   :  { %v198_v58 = vmax.f32 %v180_v51, 0.0  ;;  %vm206_vm3 = vcmp.gt.f32.partialorder %v180_v51, 0.0  ;;  %v1477_v1 = vmul.f32 %v3265_v48, %v2933_v17  ;;  %v1480_v17 = vmul.f32 %v3265_v48, %v2957_v20  ;;  %v305_v20 = vld [vmem:[%s4068_s10] sm:$0x1] }
  0xef   :  { %vm3244_vm5 = vmpackc.low %vm206_vm3, %vm204_vm2  ;;  %vm207_vm6 = vcmp.gt.f32.partialorder %v182_v55, 0.0  ;;  %v185_v60 = vpop.f32.mrb[4].mxu0  ;;  %v199_v62 = vmax.f32 %v182_v55, 0.0  ;;  %v1482_v15 = vmul.f32 %v3265_v48, %v2971_v22  ;;  %v1484_v22 = vmul.f32 %v3265_v48, %v2985_v24 }
  0xf0   :  { %v187_v63 = vpop.f32.mrb[5].mxu0  ;;  %v2613_v0 = vpack.c.bf16 %v198_v58, %v196_v57  ;;  %vm3248_vm7 = vmpackc.low %vm207_vm6, %vm205_vm4  ;;  %v186_v6 = vadd.f32 %v185_v60, %v80_v54  ;;  %v1476_v57 = vmul.f32 %v3265_v48, %v2928_v16  ;;  %v1475_v60 = vmul.f32 %v3265_v48, %v2915_v14  ;;  %v3291_v14 = vld [vmem:[%s4064_s6] ss:$0 sm:$0xff] }
  0xf1   :  { %v2611_v4 = vpack.c.bf16 %v199_v62, %v197_v61  ;;  %v188_v8 = vadd.f32 %v187_v63, %v80_v54  ;;  %v228_v62 = vld [vmem:[%s4066_s8] sm:$0x1]  ;;  %v1478_v16 = vmul.f32 %v3265_v48, %v2942_v18  ;;  %v1485_v24 = vmul.f32 %v3265_v48, %v2990_v25 }
  0xf2   :  { %v200_v49 = vmax.f32 %v186_v6, 0.0  ;;  %vm208_vm8 = vcmp.gt.f32.partialorder %v186_v6, 0.0  ;;  %1541 = vrot.lane.b32.xlu1 %v1476_v57, %s2778_s3  ;;  %1539 = vrot.lane.b32.xlu0 %v1475_v60, %s2778_s3  ;;  %v1487_v25 = vmul.f32 %v3265_v48, %v3004_v27  ;;  %v1489_v27 = vmul.f32 %v3265_v48, %v3018_v29 }
  0xf3   :  { %v191_v9 = vpop.f32.mrb[6].mxu0  ;;  %2612 = vmatprep.subr.bf16.mxu1 %v2611_v4  ;;  %v201_v51 = vmax.f32 %v188_v8, 0.0  ;;  %vm209_vm10 = vcmp.gt.f32.partialorder %v188_v8, 0.0  ;;  %v826_v4 = vld [vmem:[%s4067_s9 + $0x8] sm:$0xff]  ;;  %v828_v8 = vld [vmem:[%s4067_s9 + $0x18] sm:$0xff]  ;;  %v1491_v29 = vmul.f32 %v3265_v48, %v3032_v31  ;;  %v1493_v31 = vmul.f32 %v3265_v48, %v3046_v33 }
  0xf4   :  { %v192_v10 = vadd.f32 %v191_v9, %v85_v7  ;;  %v193_v11 = vpop.f32.mrb[7].mxu0  ;;  %2614 = vmatpush1.bf16.msra.mxu1 %v2613_v0  ;;  %v2779_v0 = vmov 1.0|1.0   ;;  %v1479_v9 = vmul.f32 %v3265_v48, %v2948_v19  ;;  %v1481_v19 = vmul.f32 %v3265_v48, %v2962_v21 }
  0xf5   :  { %v194_v13 = vadd.f32 %v193_v11, %v85_v7  ;;  %v2627_v7 = vpack.c.bf16 %v826_v4, %v825_v3  ;;  %v1483_v21 = vmul.f32 %v3265_v48, %v2976_v23  ;;  %v1495_v33 = vmul.f32 %v3265_v48, %v3060_v35 }
  0xf6   :  { %v202_v50 = vmax.f32 %v192_v10, 0.0  ;;  %vm210_vm9 = vcmp.gt.f32.partialorder %v192_v10, 0.0  ;;  %1545 = vrot.lane.b32.xlu1 %v1478_v16, %s2778_s3  ;;  %1543 = vrot.lane.b32.xlu0 %v1477_v1, %s2778_s3  ;;  %v1497_v35 = vmul.f32 %v3265_v48, %v3074_v37  ;;  %v1499_v37 = vmul.f32 %v3265_v48, %v3088_v39 }
  0xf7   :  { %vm3267_vm11 = vmpackc.low %vm210_vm9, %vm208_vm8  ;;  %v203_v53 = vmax.f32 %v194_v13, 0.0  ;;  %vm211_vm12 = vcmp.gt.f32.partialorder %v194_v13, 0.0  ;;  %v2509_v54 = vpop.f32.mrb[8].mxu0  ;;  %v2631_v13 = vpack.c.bf16 %v828_v8, %v827_v59  ;;  %v1501_v39 = vmul.f32 %v3265_v48, %v3102_v41 }
  0xf8   :  { %v2617_v55 = vpack.c.bf16 %v202_v50, %v200_v49  ;;  %vm3271_vm13 = vmpackc.low %vm211_vm12, %vm209_vm10  ;;  %v634_v47 = vpop.f32.mrb[9].mxu0  ;;  %v640_v52 = vadd.f32 %v2509_v54, %v3291_v14  ;;  %v1503_v41 = vmul.f32 %v3265_v48, %v3116_v43  ;;  %v1506_v43 = vmul.f32 %v3265_v48, %v3139_v46 }
  0xf9   :  { %v2615_v58 = vpack.c.bf16 %v203_v53, %v201_v51  ;;  %v635_v18 = vadd.f32 %v3291_v14, %v634_v47  ;;  %vm1667_vm12 = vcmask 7168  }
  0xfa   :  { %1549 = vrot.lane.b32.xlu1 %v1480_v17, %s2778_s3  ;;  %1547 = vrot.lane.b32.xlu0 %v1479_v9, %s2778_s3  ;;  %v794_v57 = vmax.f32 %v640_v52, 0.0 }
  0xfb   :  { %2616 = vmatprep.subr.bf16.mxu1 %v2615_v58  ;;  %v2512_v61 = vpop.f32.mrb[10].mxu0  ;;  %v793_v11 = vmax.f32 %v635_v18, 0.0  ;;  %v1486_v58 = vmul.f32 %v3265_v48, %v2999_v26  ;;  %v1488_v26 = vmul.f32 %v3265_v48, %v3013_v28  ;;  %v1490_v28 = vmul.f32 %v3265_v48, %v3027_v30 }
  0xfc   :  { %2618 = vmatpush1.bf16.msra.mxu1 %v2617_v55  ;;  %v644_v63 = vpop.f32.mrb[11].mxu0  ;;  %v650_v54 = vadd.f32 %v2512_v61, %v3291_v14  ;;  %v1492_v30 = vmul.f32 %v3265_v48, %v3041_v32  ;;  %v1494_v32 = vmul.f32 %v3265_v48, %v3055_v34  ;;  %v1496_v34 = vmul.f32 %v3265_v48, %v3069_v36 }
  0xfd   :  { %2620 = vmatprep.subr.msk.bf16.mxu1 %vm3248_vm7, %v2779_v0  ;;  %v645_v50 = vadd.f32 %v3291_v14, %v644_v63  ;;  %v1498_v36 = vmul.f32 %v3265_v48, %v3083_v38  ;;  %v1500_v38 = vmul.f32 %v3265_v48, %v3097_v40  ;;  %v1502_v40 = vmul.f32 %v3265_v48, %v3111_v42 }
  0xfe   :  { %1553 = vrot.lane.b32.xlu1 %v1482_v15, %s2778_s3  ;;  %1551 = vrot.lane.b32.xlu0 %v1481_v19, %s2778_s3  ;;  %v796_v61 = vmax.f32 %v650_v54, 0.0  ;;  %v1504_v42 = vmul.f32 %v3265_v48, %v3125_v44 }
  0xff   :  { %2337 = vmatmul.mubr.msk.f32.vlgmr.msra.gmra.mrb[0].mxu1 %vm230_vm14, %v228_v62  ;;  %v2515_v5 = vpop.f32.mrb[12].mxu0  ;;  %v795_v55 = vmax.f32 %v645_v50, 0.0 }
 0x100   :  { %2622 = vmatpush1.bf16.msk.msra.mxu1 %vm3244_vm5, %v2779_v0  ;;  %373 = vmatprep.mubr.f32.mxu1 %v2776_v2  ;;  %v654_v6 = vpop.f32.mrb[13].mxu0  ;;  %v660_v16 = vadd.f32 %v2515_v5, %v3291_v14 }
 0x101   :  { %2624 = vmatprep.subr.msk.bf16.mxu1 %vm3271_vm13, %v2779_v0  ;;  %v655_v56 = vadd.f32 %v3291_v14, %v654_v6 }
 0x102   :  { %1557 = vrot.lane.b32.xlu1 %v1484_v22, %s2778_s3  ;;  %1555 = vrot.lane.b32.xlu0 %v1483_v21, %s2778_s3  ;;  %v798_v5 = vmax.f32 %v660_v16, 0.0 }
 0x103   :  { %v2518_v10 = vpop.f32.mrb[14].mxu0  ;;  %v797_v60 = vmax.f32 %v655_v56, 0.0 }
 0x104   :  { %2626 = vmatpush1.bf16.msk.msra.mxu1 %vm3267_vm11, %v2779_v0  ;;  %v664_v12 = vpop.f32.mrb[15].mxu0  ;;  %v670_v6 = vadd.f32 %v2518_v10, %v3291_v14 }
 0x105   :  { %2628 = vmatprep.subr.bf16.mxu1 %v2627_v7  ;;  %v665_v62 = vadd.f32 %v3291_v14, %v664_v12 }
 0x106   :  { %1561 = vrot.lane.b32.xlu1 %v1486_v58, %s2778_s3  ;;  %1559 = vrot.lane.b32.xlu0 %v1485_v24, %s2778_s3  ;;  %v800_v9 = vmax.f32 %v670_v6, 0.0 }
 0x107   :  { %2346 = vmatmul.mubr.msk.f32.vlgmr.msra.gmra.mrb[2].mxu1 %vm230_vm14, %v305_v20  ;;  %v2521_v49 = vpop.f32.mrb[16].mxu0  ;;  %v799_v4 = vmax.f32 %v665_v62, 0.0 }
 0x108   :  { %2630 = vmatpush3.bf16.msra.mxu1 %v2627_v7  ;;  %2563 = vmatprep.mubr.msk.f32.mxu1 %vm230_vm14, %v793_v11  ;;  %v674_v51 = vpop.f32.mrb[17].mxu0  ;;  %v680_v10 = vadd.f32 %v2521_v49, %v3291_v14 }
 0x109   :  { %2632 = vmatprep.subr.bf16.mxu1 %v2631_v13  ;;  %v675_v1 = vadd.f32 %v3291_v14, %v674_v51 }
 0x10a   :  { %1565 = vrot.lane.b32.xlu1 %v1488_v26, %s2778_s3  ;;  %1563 = vrot.lane.b32.xlu0 %v1487_v25, %s2778_s3  ;;  %v802_v15 = vmax.f32 %v680_v10, 0.0 }
 0x10b   :  { %v2524_v53 = vpop.f32.mrb[18].mxu0  ;;  %v801_v17 = vmax.f32 %v675_v1, 0.0 }
 0x10c   :  { %2634 = vmatpush3.bf16.msra.mxu1 %v2631_v13  ;;  %v684_v47 = vpop.f32.mrb[19].mxu0  ;;  %v690_v19 = vadd.f32 %v2524_v53, %v3291_v14 }
 0x10d   :  { %v685_v59 = vadd.f32 %v3291_v14, %v684_v47 }
 0x10e   :  { %1569 = vrot.lane.b32.xlu1 %v1490_v28, %s2778_s3  ;;  %1567 = vrot.lane.b32.xlu0 %v1489_v27, %s2778_s3  ;;  %v804_v22 = vmax.f32 %v690_v19, 0.0 }
 0x10f   :  { %2564 = vmatmul.mubr.msk.f32.vlgmr.msra.gmra.mrb[4].mxu1 %vm230_vm14, %v794_v57  ;;  %v2527_v23 = vpop.f32.mrb[20].mxu0  ;;  %v803_v11 = vmax.f32 %v685_v59, 0.0 }
 0x110   :  { %2566 = vmatprep.mubr.msk.f32.mxu1 %vm230_vm14, %v795_v55  ;;  %v694_v63 = vpop.f32.mrb[21].mxu0  ;;  %v700_v21 = vadd.f32 %v2527_v23, %v3291_v14 }
 0x111   :  { %v695_v12 = vadd.f32 %v3291_v14, %v694_v63 }
 0x112   :  { %1573 = vrot.lane.b32.xlu1 %v1492_v30, %s2778_s3  ;;  %1571 = vrot.lane.b32.xlu0 %v1491_v29, %s2778_s3  ;;  %v806_v57 = vmax.f32 %v700_v21, 0.0  ;;  %v1505_v29 = vmul.f32 %v3265_v48, %v3130_v45 }
 0x113   :  { %2567 = vmatmul.mubr.msk.f32.gmra.mrb[6].mxu1 %vm230_vm14, %v796_v61  ;;  %v2530_v3 = vpop.f32.mrb[22].mxu0  ;;  %v805_v50 = vmax.f32 %v695_v12, 0.0 }
 0x114   :  { %2569 = vmatprep.mubr.msk.f32.mxu1 %vm230_vm14, %v797_v60  ;;  %v704_v18 = vpop.f32.mrb[23].mxu0  ;;  %v710_v54 = vadd.f32 %v2530_v3, %v3291_v14 }
 0x115   :  { %v705_v51 = vadd.f32 %v3291_v14, %v704_v18 }
 0x116   :  { %1577 = vrot.lane.b32.xlu1 %v1494_v32, %s2778_s3  ;;  %1575 = vrot.lane.b32.xlu0 %v1493_v31, %s2778_s3  ;;  %v808_v62 = vmax.f32 %v710_v54, 0.0  ;;  %v1717_v31 = vpop.permute.xlu1 %1716 }
 0x117   :  { %2570 = vmatmul.mubr.msk.f32.gmra.mrb[8].mxu1 %vm230_vm14, %v798_v5  ;;  %v2533_v7 = vpop.f32.mrb[24].mxu0  ;;  %v807_v55 = vmax.f32 %v705_v51, 0.0 }
 0x118   :  { %2572 = vmatprep.mubr.msk.f32.mxu1 %vm230_vm14, %v799_v4  ;;  %v714_v8 = vpop.f32.mrb[25].mxu0  ;;  %v720_v63 = vadd.f32 %v2533_v7, %v3291_v14 }
 0x119   :  { %v715_v56 = vadd.f32 %v3291_v14, %v714_v8 }
 0x11a   :  { %1581 = vrot.lane.b32.xlu1 %v1496_v34, %s2778_s3  ;;  %1579 = vrot.lane.b32.xlu0 %v1495_v33, %s2778_s3  ;;  %v810_v3 = vmax.f32 %v720_v63, 0.0 }
 0x11b   :  { %2573 = vmatmul.mubr.msk.f32.gmra.mrb[10].mxu1 %vm230_vm14, %v800_v9  ;;  %v2536_v20 = vpop.f32.mrb[26].mxu0  ;;  %v809_v24 = vmax.f32 %v715_v56, 0.0 }
 0x11c   :  { %2575 = vmatprep.mubr.msk.f32.mxu1 %vm230_vm14, %v801_v17  ;;  %v724_v13 = vpop.f32.mrb[27].mxu0  ;;  %v730_v4 = vadd.f32 %v2536_v20, %v3291_v14 }
 0x11d   :  { %v725_v23 = vadd.f32 %v3291_v14, %v724_v13 }
 0x11e   :  { %1585 = vrot.lane.b32.xlu1 %v1498_v36, %s2778_s3  ;;  %1583 = vrot.lane.b32.xlu0 %v1497_v35, %s2778_s3  ;;  %v812_v28 = vmax.f32 %v730_v4, 0.0  ;;  %v1727_v36 = vpop.permute.xlu1 %1726 }
 0x11f   :  { %2576 = vmatmul.mubr.msk.f32.gmra.mrb[12].mxu1 %vm230_vm14, %v802_v15  ;;  %v2539_v49 = vpop.f32.mrb[28].mxu0  ;;  %v811_v16 = vmax.f32 %v725_v23, 0.0  ;;  %v1712_v15 = vpop.permute.xlu0 %1711 }
 0x120   :  { %2578 = vmatprep.mubr.msk.f32.mxu1 %vm230_vm14, %v803_v11  ;;  %v734_v52 = vpop.f32.mrb[29].mxu0  ;;  %v740_v27 = vadd.f32 %v2539_v49, %v3291_v14 }
 0x121   :  { %v735_v26 = vadd.f32 %v3291_v14, %v734_v52 }
 0x122   :  { %1589 = vrot.lane.b32.xlu1 %v1500_v38, %s2778_s3  ;;  %1587 = vrot.lane.b32.xlu0 %v1499_v37, %s2778_s3  ;;  %v814_v10 = vmax.f32 %v740_v27, 0.0  ;;  %v1862_v38 = vld [vmem:[%s4068_s10] sm:$0x1]  ;;  %v3490_v37 = vpop.permute.xlu1 %1315  ;;  %s2322_s10 = sld [smem:[#allocation4 + $0x6]] }
 0x123   :  { %2579 = vmatmul.mubr.msk.f32.gmra.mrb[14].mxu1 %vm230_vm14, %v804_v22  ;;  %v2542_v53 = vpop.f32.mrb[30].mxu0  ;;  %v813_v18 = vmax.f32 %v735_v26, 0.0  ;;  %v1722_v56 = vpop.permute.xlu0 %1721 }
 0x124   :  { %2581 = vmatprep.mubr.msk.f32.mxu1 %vm230_vm14, %v805_v50  ;;  %v744_v47 = vpop.f32.mrb[31].mxu0  ;;  %v750_v44 = vadd.f32 %v2542_v53, %v3291_v14 }
 0x125   :  { %v745_v5 = vadd.f32 %v3291_v14, %v744_v47 }
 0x126   :  { %1593 = vrot.lane.b32.xlu1 %v1502_v40, %s2778_s3  ;;  %1591 = vrot.lane.b32.xlu0 %v1501_v39, %s2778_s3  ;;  %v816_v19 = vmax.f32 %v750_v44, 0.0 }
 0x127   :  { %2582 = vmatmul.mubr.msk.f32.gmra.mrb[16].mxu1 %vm230_vm14, %v806_v57  ;;  %v2545_v58 = vpop.f32.mrb[32].mxu0  ;;  %v815_v17 = vmax.f32 %v745_v5, 0.0 }
 0x128   :  { %2584 = vmatprep.mubr.msk.f32.mxu1 %vm230_vm14, %v807_v55  ;;  %v754_v60 = vpop.f32.mrb[33].mxu0  ;;  %v760_v32 = vadd.f32 %v2545_v58, %v3291_v14 }
 0x129   :  { %v755_v59 = vadd.f32 %v3291_v14, %v754_v60 }
 0x12a   :  { %1597 = vrot.lane.b32.xlu1 %v1504_v42, %s2778_s3  ;;  %1595 = vrot.lane.b32.xlu0 %v1503_v41, %s2778_s3  ;;  %v818_v22 = vmax.f32 %v760_v32, 0.0 }
 0x12b   :  { %2585 = vmatmul.mubr.msk.f32.gmra.mrb[18].mxu1 %vm230_vm14, %v808_v62  ;;  %v2548_v61 = vpop.f32.mrb[34].mxu0  ;;  %v817_v11 = vmax.f32 %v755_v59, 0.0 }
 0x12c   :  { %2587 = vmatprep.mubr.msk.f32.mxu1 %vm230_vm14, %v809_v24  ;;  %v764_v25 = vpop.f32.mrb[35].mxu0  ;;  %v770_v21 = vadd.f32 %v2548_v61, %v3291_v14  ;;  %v3492_v61 = vpop.permute.xlu0 %1313 }
 0x12d   :  { %v765_v12 = vadd.f32 %v3291_v14, %v764_v25 }
 0x12e   :  { %1601 = vrot.lane.b32.xlu1 %v1506_v43, %s2778_s3  ;;  %1599 = vrot.lane.b32.xlu0 %v1505_v29, %s2778_s3  ;;  %v820_v47 = vmax.f32 %v770_v21, 0.0 }
 0x12f   :  { %2588 = vmatmul.mubr.msk.f32.gmra.mrb[20].mxu1 %vm230_vm14, %v810_v3  ;;  %v2551_v1 = vpop.f32.mrb[36].mxu0  ;;  %v819_v49 = vmax.f32 %v765_v12, 0.0 }
 0x130   :  { %2590 = vmatprep.mubr.msk.f32.mxu1 %vm230_vm14, %v811_v16  ;;  %v774_v6 = vpop.f32.mrb[37].mxu0  ;;  %v780_v57 = vadd.f32 %v2551_v1, %v3291_v14  ;;  %v3494_v16 = vpop.permute.xlu1 %1319 }
 0x131   :  { %v775_v50 = vadd.f32 %v3291_v14, %v774_v6  ;;  %v3496_v26 = vpop.permute.xlu0 %1317 }
 0x132   :  { %v822_v62 = vmax.f32 %v780_v57, 0.0 }
 0x133   :  { %2591 = vmatmul.mubr.msk.f32.gmra.mrb[22].mxu1 %vm230_vm14, %v812_v28  ;;  %v2554_v7 = vpop.f32.mrb[38].mxu0  ;;  %v821_v53 = vmax.f32 %v775_v50, 0.0 }
 0x134   :  { %v3448_v8 = vadd.f32 %v2554_v7, %v3291_v14  ;;  %2593 = vmatprep.mubr.msk.f32.mxu1 %vm230_vm14, %v813_v18  ;;  %v784_v9 = vpop.f32.mrb[39].mxu0  ;;  %v3498_v25 = vpop.permute.xlu1 %1323 }
 0x135   :  { %v3453_v30 = vadd.f32 %v3291_v14, %v784_v9 }
 0x136   :  { %v824_v14 = vmax.f32 %v3448_v8, 0.0 }
 0x137   :  { %2594 = vmatmul.mubr.msk.f32.gmra.mrb[24].mxu1 %vm230_vm14, %v814_v10  ;;  %v1815_v20 = vpop.f32.mrb[40].mxu0  ;;  %v823_v24 = vmax.f32 %v3453_v30, 0.0 }
 0x138   :  { %v1817_v13 = vpop.f32.mrb[41].mxu0  ;;  %2596 = vmatprep.mubr.msk.f32.mxu1 %vm230_vm14, %v815_v17  ;;  %v1816_v46 = vadd.f32 %v1815_v20, %v1712_v15  ;;  %v3502_v3 = vpop.permute.xlu1 %1327 }
 0x139   :  { %v1818_v45 = vadd.f32 %v1817_v13, %v1712_v15  ;;  %v386_v13 = vlaneseq  ;;  %v2780_v15 = vmov 1966171168  }
 0x13a   :  { %vm1838_vm15 = vcmp.gt.f32.partialorder %v1816_v46, 0.0 }
 0x13b   :  { %2597 = vmatmul.mubr.msk.f32.gmra.mrb[26].mxu1 %vm230_vm14, %v816_v19  ;;  %v1821_v48 = vpop.f32.mrb[42].mxu0  ;;  %vm1839_vm1 = vcmp.gt.f32.partialorder %v1818_v45, 0.0  ;;  %v384_v19 = vunpack.c.l.s4 %v2780_v15  ;;  %v3560_v45 = vshrl.u32 %v386_v13, 7  ;;  %vm3569_vm11 = vcmp.lt.s32.totalorder %v386_v13, 256 }
 0x13c   :  { %v1822_v51 = vadd.f32 %v1821_v48, %v1717_v31  ;;  %v1823_v52 = vpop.f32.mrb[43].mxu0  ;;  %2599 = vmatprep.mubr.msk.f32.mxu1 %vm230_vm14, %v817_v11  ;;  %v3506_v4 = vpop.permute.xlu1 %1331  ;;  %v3586_v13 = vstv %s2317_s26 }
 0x13d   :  { %v1824_v34 = vadd.f32 %v1823_v52, %v1717_v31  ;;  %v3558_v31 = vstv %s2322_s10  ;;  %4082 = vst [vmem:[#allocation14_spill] sm:$0xff] %v3560_v45  ;;  %v385_v48 = vunpack.c.0.s8 %v384_v19 }
 0x13e   :  { %vm1840_vm0 = vcmp.gt.f32.partialorder %v1822_v51, 0.0 }
 0x13f   :  { %vm2637_vm2 = vmpackc.low %vm1840_vm0, %vm1838_vm15  ;;  %vm1841_vm3 = vcmp.gt.f32.partialorder %v1824_v34, 0.0  ;;  %2600 = vmatmul.mubr.msk.f32.gmra.mrb[28].mxu1 %vm230_vm14, %v818_v22  ;;  %v1827_v33 = vpop.f32.mrb[44].mxu0  ;;  %v388_v21 = vsub.s32 %v385_v48, %v3560_v45 }
 0x140   :  { %vm2635_vm4 = vmpackc.low %vm1841_vm3, %vm1839_vm1  ;;  %v1829_v55 = vpop.f32.mrb[45].mxu0  ;;  %2602 = vmatprep.mubr.msk.f32.mxu1 %vm230_vm14, %v819_v49  ;;  %v1828_v54 = vadd.f32 %v1827_v33, %v1722_v56  ;;  %v3510_v39 = vpop.permute.xlu1 %1335 }
 0x141   :  { %2636 = vmatprep.subr.msk.bf16.mxu1 %vm2635_vm4, %v2779_v0  ;;  %v1830_v35 = vadd.f32 %v1829_v55, %v1722_v56  ;;  %v403_v55 = vstv %s47_s25 }
 0x142   :  { %2638 = vmatpush1.bf16.msk.msra.mxu1 %vm2637_vm2, %v2779_v0  ;;  %vm1842_vm5 = vcmp.gt.f32.partialorder %v1828_v54, 0.0 }
 0x143   :  { %2603 = vmatmul.mubr.msk.f32.gmra.mrb[30].mxu1 %vm230_vm14, %v820_v47  ;;  %v1833_v58 = vpop.f32.mrb[46].mxu0  ;;  %vm1843_vm7 = vcmp.gt.f32.partialorder %v1830_v35, 0.0 }
 0x144   :  { %v1834_v23 = vadd.f32 %v1833_v58, %v1727_v36  ;;  %v1835_v60 = vpop.f32.mrb[47].mxu0  ;;  %2605 = vmatprep.mubr.msk.f32.mxu1 %vm230_vm14, %v821_v53  ;;  %v3514_v18 = vpop.permute.xlu1 %1339  ;;  %v2658_v58 = vld [vmem:[%s4060_s2] sm:$0xff] }
 0x145   :  { %v1836_v63 = vadd.f32 %v1835_v60, %v1727_v36 }
 0x146   :  { %vm1844_vm6 = vcmp.gt.f32.partialorder %v1834_v23, 0.0 }
 0x147   :  { %vm2641_vm8 = vmpackc.low %vm1844_vm6, %vm1842_vm5  ;;  %vm1845_vm9 = vcmp.gt.f32.partialorder %v1836_v63, 0.0  ;;  %2606 = vmatmul.mubr.msk.f32.gmra.mrb[32].mxu1 %vm230_vm14, %v822_v62 }
 0x148   :  { %vm2639_vm10 = vmpackc.low %vm1845_vm9, %vm1843_vm7  ;;  %2608 = vmatprep.mubr.msk.f32.mxu1 %vm230_vm14, %v823_v24  ;;  %v3518_v6 = vpop.permute.xlu1 %1343  ;;  %v404_v24 = vmul.f32 %v2658_v58, %v403_v55 }
 0x149   :  { %2640 = vmatprep.subr.msk.bf16.mxu1 %vm2639_vm10, %v2779_v0 }
 0x14a   :  { %2642 = vmatpush1.bf16.msk.msra.mxu1 %vm2641_vm8, %v2779_v0  ;;  %v3500_v0 = vpop.permute.xlu0 %1321 }
 0x14b   :  { %2609 = vmatmul.mubr.msk.f32.gmra.mrb[34].mxu1 %vm230_vm14, %v824_v14 }
 0x14c   :  { %1931 = vmatprep.mubr.f32.mxu1 %v2776_v2  ;;  %v3522_v27 = vpop.permute.xlu1 %1347 }
 0x14e   :  { %v3504_v2 = vpop.permute.xlu0 %1325 }
 0x14f   :  { %2435 = vmatmul.mubr.msk.f32.vlgmr.msra.gmra.mrb[36].mxu1 %vm230_vm14, %v1862_v38 }
 0x150   :  { %v3526_v41 = vpop.permute.xlu1 %1351 }
 0x152   :  { %v3508_v40 = vpop.permute.xlu0 %1329 }
 0x154   :  { %v3530_v17 = vpop.permute.xlu1 %1355 }
 0x156   :  { %v3512_v1 = vpop.permute.xlu0 %1333 }
 0x158   :  { %v3534_v8 = vpop.permute.xlu1 %1359 }
 0x15a   :  { %v3516_v5 = vpop.permute.xlu0 %1337 }
 0x15c   :  { %v3538_v10 = vpop.permute.xlu1 %1363 }
 0x15e   :  { %v3520_v28 = vpop.permute.xlu0 %1341 }
 0x160   :  { %v3542_v30 = vpop.permute.xlu1 %1367 }
 0x162   :  { %v3524_v42 = vpop.permute.xlu0 %1345 }
 0x164   :  { %v3546_v29 = vpop.permute.xlu1 %1371 }
 0x166   :  { %v3528_v7 = vpop.permute.xlu0 %1349 }
 0x168   :  { %v3550_v11 = vpop.permute.xlu1 %1375 }
 0x16a   :  { %v3532_v59 = vpop.permute.xlu0 %1353 }
 0x16c   :  { %v3554_v32 = vpop.permute.xlu1 %1541 }
 0x16e   :  { %v3536_v9 = vpop.permute.xlu0 %1357 }
 0x170   :  { %v3564_v22 = vpop.permute.xlu1 %1545 }
 0x172   :  { %v3540_v44 = vpop.permute.xlu0 %1361 }
 0x174   :  { %v3573_v57 = vpop.permute.xlu1 %1549 }
 0x176   :  { %v3544_v43 = vpop.permute.xlu0 %1365 }
 0x178   :  { %v3582_v63 = vpop.permute.xlu1 %1553 }
 0x17a   :  { %v3548_v20 = vpop.permute.xlu0 %1369 }
 0x17c   :  { %v3594_v55 = vpop.permute.xlu1 %1557 }
 0x17e   :  { %v3552_v12 = vpop.permute.xlu0 %1373 }
 0x17f   :  { %4081 = vst [vmem:[#allocation13_spill] sm:$0xff] %v3552_v12 }
 0x182   :  { %v3556_v46 = vpop.permute.xlu0 %1539 }
 0x186   :  { %v3567_v34 = vpop.permute.xlu0 %1543 }
 0x18a   :  { %v3575_v35 = vpop.permute.xlu0 %1547 }
 0x18e   :  { %v3584_v14 = vpop.permute.xlu0 %1551 }
 0x1d2   :  { %v300_v49 = vpop.f32.mrb[0].mxu1 }
 0x1d3   :  { %v301_v50 = vadd.f32 %v300_v49, %v3558_v31  ;;  %v302_v51 = vpop.f32.mrb[1].mxu1  ;;  %v3589_v49 = vstv %s2318_s29 }
 0x1d4   :  { %v303_v52 = vadd.f32 %v302_v51, %v3558_v31 }
 0x1d6   :  { %v382_v33 = vcombine.low %v301_v50, %v303_v52 }
 0x1d8   :  { %v389_v53 = vrot.slane %v382_v33, %v388_v21 }
 0x1da   :  { %v375_v47 = vpop.f32.mrb[2].mxu1  ;;  %v396_v54 = vrot.slane %v389_v53, %v388_v21 }
 0x1db   :  { %v377_v36 = vpop.f32.mrb[3].mxu1 }
 0x1dc   :  { %v407_v23 = vcombine.low %v375_v47, %v377_v36  ;;  %402 = vst.msk [vmem:[#allocation5] sm:$0x3] %vm3569_vm11, %v396_v54 }
 0x1de   :  { %v408_v60 = vrot.slane %v407_v23, 7 }
 0x1e0   :  { %v410_v62 = vadd.f32 %v408_v60, %v404_v24  ;;  %v3598_v24 = vpop.permute.xlu0 %1555 }
 0x1e2   :  { %v2565_v38 = vpop.f32.mrb[4].mxu1  ;;  %v418_v15 = vrot.slane %v410_v62, %v388_v21 }
 0x1e3   :  { %v997_v19 = vadd.f32 %v2565_v38, %v3558_v31  ;;  %v991_v48 = vpop.f32.mrb[5].mxu1 }
 0x1e4   :  { %v992_v50 = vadd.f32 %v991_v48, %v3558_v31  ;;  %v419_v51 = vcombine.high %v418_v15, %v418_v15  ;;  %v3609_v48 = vstv %s2320_s30 }
 0x1e5   :  { %v1152_v52 = vmul.f32 %v3586_v13, %v997_v19 }
 0x1e6   :  { %v1151_v33 = vmul.f32 %v3586_v13, %v992_v50  ;;  %v2568_v53 = vpop.f32.mrb[6].mxu1  ;;  %v426_v47 = vrot.slane %v419_v51, %v388_v21  ;;  %v2659_v21 = vld [vmem:[%s4059_s1 + $0x8] sm:$0xff]  ;;  %v2660_v50 = vld [vmem:[%s4059_s1] sm:$0xff] }
 0x1e7   :  { %v1185_v54 = vadd.f32 %v3589_v49, %v1152_v52  ;;  %v1007_v36 = vadd.f32 %v2568_v53, %v3558_v31  ;;  %v1001_v58 = vpop.f32.mrb[7].mxu1 }
 0x1e8   :  { %v1184_v23 = vadd.f32 %v3589_v49, %v1151_v33  ;;  %v1002_v60 = vadd.f32 %v1001_v58, %v3558_v31  ;;  %428 = vst.msk [vmem:[#allocation7] sm:$0x3] %vm3569_vm11, %v426_v47  ;;  %v3620_v58 = vpop.permute.xlu1 %1561 }
 0x1e9   :  { %v1154_v62 = vmul.f32 %v3586_v13, %v1007_v36  ;;  %v1217_v38 = vsub.f32 %v2659_v21, %v1185_v54 }
 0x1ea   :  { %v1153_v15 = vmul.f32 %v3586_v13, %v1002_v60  ;;  %v2571_v19 = vpop.f32.mrb[8].mxu1  ;;  %v1216_v51 = vsub.f32 %v2660_v50, %v1184_v23  ;;  %v2661_v23 = vld [vmem:[%s4059_s1 + $0x18] sm:$0xff] }
 0x1eb   :  { %v1187_v56 = vadd.f32 %v3589_v49, %v1154_v62  ;;  %v1017_v52 = vadd.f32 %v2571_v19, %v3558_v31  ;;  %v1011_v33 = vpop.f32.mrb[9].mxu1  ;;  %v1410_v53 = vsub.f32 %v1217_v38, %v3490_v37  ;;  %v3627_v19 = vpop.permute.xlu0 %1559 }
 0x1ec   :  { %v1186_v47 = vadd.f32 %v3589_v49, %v1153_v15  ;;  %v1012_v54 = vadd.f32 %v1011_v33, %v3558_v31  ;;  %v1409_v36 = vsub.f32 %v1216_v51, %v3492_v61  ;;  %v2662_v61 = vld [vmem:[%s4059_s1 + $0x10] sm:$0xff] }
 0x1ed   :  { %v1156_v60 = vmul.f32 %v3586_v13, %v1017_v52  ;;  %v1443_v21 = vmul.f32 %v3609_v48, %v1410_v53  ;;  %v1219_v62 = vsub.f32 %v2661_v23, %v1187_v56 }
 0x1ee   :  { %v1155_v37 = vmul.f32 %v3586_v13, %v1012_v54  ;;  %v2574_v38 = vpop.f32.mrb[10].mxu1  ;;  %v1442_v15 = vmul.f32 %v3609_v48, %v1409_v36  ;;  %v1218_v50 = vsub.f32 %v2662_v61, %v1186_v47 }
 0x1ef   :  { %v1189_v51 = vadd.f32 %v3589_v49, %v1156_v60  ;;  %v1027_v52 = vadd.f32 %v2574_v38, %v3558_v31  ;;  %v1636_v33 = vsub.f32 %v1443_v21, %v3554_v32  ;;  %v1021_v56 = vpop.f32.mrb[11].mxu1  ;;  %v1412_v53 = vsub.f32 %v1219_v62, %v3494_v16  ;;  %v2663_v32 = vld [vmem:[%s4059_s1 + $0x28] sm:$0xff] }
 0x1f0   :  { %v1188_v54 = vadd.f32 %v3589_v49, %v1155_v37  ;;  %v1022_v23 = vadd.f32 %v1021_v56, %v3558_v31  ;;  %v1635_v36 = vsub.f32 %v1442_v15, %v3556_v46  ;;  %v1411_v45 = vsub.f32 %v1218_v50, %v3496_v26  ;;  %v2664_v26 = vld [vmem:[%s4059_s1 + $0x20] sm:$0xff]  ;;  %v3654_v37 = vpop.permute.xlu1 %1565 }
 0x1f1   :  { %v1158_v12 = vmul.f32 %v3586_v13, %v1027_v52  ;;  %1669 = vst.msk [vmem:[#allocation2 + $0x8] sm:$0xff] %vm1667_vm12, %v1636_v33  ;;  %v1445_v47 = vmul.f32 %v3609_v48, %v1412_v53  ;;  %v1221_v60 = vsub.f32 %v2663_v32, %v1189_v51  ;;  %v3660_v52 = vpop.permute.xlu0 %1563 }
 0x1f2   :  { %v1157_v16 = vmul.f32 %v3586_v13, %v1022_v23  ;;  %1668 = vst.msk [vmem:[#allocation2] sm:$0xff] %vm1667_vm12, %v1635_v36  ;;  %v2577_v21 = vpop.f32.mrb[12].mxu1  ;;  %v1444_v46 = vmul.f32 %v3609_v48, %v1411_v45  ;;  %v1220_v62 = vsub.f32 %v2664_v26, %v1188_v54 }
 0x1f3   :  { %v1191_v38 = vadd.f32 %v3589_v49, %v1158_v12  ;;  %v1037_v15 = vadd.f32 %v2577_v21, %v3558_v31  ;;  %v1638_v61 = vsub.f32 %v1445_v47, %v3564_v22  ;;  %v1031_v50 = vpop.f32.mrb[13].mxu1  ;;  %v1414_v51 = vsub.f32 %v1221_v60, %v3498_v25  ;;  %v2665_v25 = vld [vmem:[%s4059_s1 + $0x38] sm:$0xff] }
 0x1f4   :  { %v1190_v45 = vadd.f32 %v3589_v49, %v1157_v16  ;;  %v1032_v33 = vadd.f32 %v1031_v50, %v3558_v31  ;;  %v1637_v56 = vsub.f32 %v1444_v46, %v3567_v34  ;;  %v1413_v53 = vsub.f32 %v1220_v62, %v3500_v0  ;;  %v2666_v0 = vld [vmem:[%s4059_s1 + $0x30] sm:$0xff]  ;;  %v3686_v50 = vpop.permute.xlu1 %1569 }
 0x1f5   :  { %v1160_v54 = vmul.f32 %v3586_v13, %v1037_v15  ;;  %1671 = vst.msk [vmem:[#allocation2 + $0x18] sm:$0xff] %vm1667_vm12, %v1638_v61  ;;  %v1447_v12 = vmul.f32 %v3609_v48, %v1414_v51  ;;  %v1223_v22 = vsub.f32 %v2665_v25, %v1191_v38 }
 0x1f6   :  { %v1159_v23 = vmul.f32 %v3586_v13, %v1032_v33  ;;  %1670 = vst.msk [vmem:[#allocation2 + $0x10] sm:$0xff] %vm1667_vm12, %v1637_v56  ;;  %v2580_v36 = vpop.f32.mrb[14].mxu1  ;;  %v1446_v34 = vmul.f32 %v3609_v48, %v1413_v53  ;;  %v1222_v47 = vsub.f32 %v2666_v0, %v1190_v45  ;;  %v3694_v56 = vpop.permute.xlu0 %1567 }
 0x1f7   :  { %v1193_v32 = vadd.f32 %v3589_v49, %v1160_v54  ;;  %v1047_v60 = vadd.f32 %v2580_v36, %v3558_v31  ;;  %v1640_v16 = vsub.f32 %v1447_v12, %v3573_v57  ;;  %v1041_v21 = vpop.f32.mrb[15].mxu1  ;;  %v1416_v46 = vsub.f32 %v1223_v22, %v3502_v3  ;;  %v2667_v3 = vld [vmem:[%s4059_s1 + $0x48] sm:$0xff]  ;;  %v2668_v54 = vld [vmem:[%s4059_s1 + $0x40] sm:$0xff] }
 0x1f8   :  { %v1192_v26 = vadd.f32 %v3589_v49, %v1159_v23  ;;  %v1042_v62 = vadd.f32 %v1041_v21, %v3558_v31  ;;  %v1639_v38 = vsub.f32 %v1446_v34, %v3575_v35  ;;  %v1947_v15 = vld [vmem:[#allocation2 + $0x8] sm:$0xff]  ;;  %v1415_v61 = vsub.f32 %v1222_v47, %v3504_v2 }
 0x1f9   :  { %v1162_v51 = vmul.f32 %v3586_v13, %v1047_v60  ;;  %1673 = vst.msk [vmem:[#allocation2 + $0x28] sm:$0xff] %vm1667_vm12, %v1640_v16  ;;  %1985 = vperm.xlu1 %2655, %v1947_v15   ;;  %v1449_v57 = vmul.f32 %v3609_v48, %v1416_v46  ;;  %v1946_v45 = vld [vmem:[#allocation2] sm:$0xff]  ;;  %v1225_v33 = vsub.f32 %v2667_v3, %v1193_v32 }
 0x1fa   :  { %v1161_v35 = vmul.f32 %v3586_v13, %v1042_v62  ;;  %1672 = vst.msk [vmem:[#allocation2 + $0x20] sm:$0xff] %vm1667_vm12, %v1639_v38  ;;  %v2583_v2 = vpop.f32.mrb[16].mxu1  ;;  %1980 = vperm.xlu0 %2654, %v1946_v45   ;;  %v1448_v53 = vmul.f32 %v3609_v48, %v1415_v61  ;;  %v1224_v12 = vsub.f32 %v2668_v54, %v1192_v26  ;;  %v2670_v38 = vld [vmem:[%s4059_s1 + $0x50] sm:$0xff]  ;;  %v3722_v61 = vpop.permute.xlu1 %1573 }
 0x1fb   :  { %v1195_v25 = vadd.f32 %v3589_v49, %v1162_v51  ;;  %v1057_v22 = vadd.f32 %v2583_v2, %v3558_v31  ;;  %v1642_v23 = vsub.f32 %v1449_v57, %v3582_v63  ;;  %v1051_v36 = vpop.f32.mrb[17].mxu1  ;;  %v1418_v34 = vsub.f32 %v1225_v33, %v3506_v4  ;;  %v2669_v4 = vld [vmem:[%s4059_s1 + $0x58] sm:$0xff] }
 0x1fc   :  { %v1194_v0 = vadd.f32 %v3589_v49, %v1161_v35  ;;  %v1052_v47 = vadd.f32 %v1051_v36, %v3558_v31  ;;  %v1641_v32 = vsub.f32 %v1448_v53, %v3584_v14  ;;  %v1949_v60 = vld [vmem:[#allocation2 + $0x18] sm:$0xff]  ;;  %v1417_v16 = vsub.f32 %v1224_v12, %v3508_v40  ;;  %v3728_v35 = vpop.permute.xlu0 %1571 }
 0x1fd   :  { %v1164_v21 = vmul.f32 %v3586_v13, %v1057_v22  ;;  %1675 = vst.msk [vmem:[#allocation2 + $0x38] sm:$0xff] %vm1667_vm12, %v1642_v23  ;;  %1995 = vperm.xlu1 %2655, %v1949_v60   ;;  %v1451_v46 = vmul.f32 %v3609_v48, %v1418_v34  ;;  %v1948_v63 = vld [vmem:[#allocation2 + $0x10] sm:$0xff]  ;;  %v1227_v26 = vsub.f32 %v2669_v4, %v1195_v25 }
 0x1fe   :  { %v1163_v62 = vmul.f32 %v3586_v13, %v1052_v47  ;;  %1674 = vst.msk [vmem:[#allocation2 + $0x30] sm:$0xff] %vm1667_vm12, %v1641_v32  ;;  %v2586_v14 = vpop.f32.mrb[18].mxu1  ;;  %1990 = vperm.xlu0 %2654, %v1948_v63   ;;  %v1450_v40 = vmul.f32 %v3609_v48, %v1417_v16  ;;  %v1226_v15 = vsub.f32 %v2670_v38, %v1194_v0  ;;  %v2672_v0 = vld [vmem:[%s4059_s1 + $0x60] sm:$0xff] }
 0x1ff   :  { %v1197_v51 = vadd.f32 %v3589_v49, %v1164_v21  ;;  %v1067_v57 = vadd.f32 %v2586_v14, %v3558_v31  ;;  %v1644_v45 = vsub.f32 %v1451_v46, %v3594_v55  ;;  %v1061_v3 = vpop.f32.mrb[19].mxu1  ;;  %v1420_v33 = vsub.f32 %v1227_v26, %v3510_v39  ;;  %v2671_v39 = vld [vmem:[%s4059_s1 + $0x68] sm:$0xff] }
 0x200   :  { %v1196_v2 = vadd.f32 %v3589_v49, %v1163_v62  ;;  %v1062_v53 = vadd.f32 %v1061_v3, %v3558_v31  ;;  %v1643_v54 = vsub.f32 %v1450_v40, %v3598_v24  ;;  %v1951_v12 = vld [vmem:[#allocation2 + $0x28] sm:$0xff]  ;;  %v1419_v25 = vsub.f32 %v1226_v15, %v3512_v1  ;;  %v3754_v40 = vpop.permute.xlu1 %1577  ;;  %v2674_v3 = vld [vmem:[%s4059_s1 + $0x70] sm:$0xff] }
 0x201   :  { %v1166_v22 = vmul.f32 %v3586_v13, %v1067_v57  ;;  %1677 = vst.msk [vmem:[#allocation2 + $0x48] sm:$0xff] %vm1667_vm12, %v1644_v45  ;;  %2005 = vperm.xlu1 %2655, %v1951_v12   ;;  %v1453_v55 = vmul.f32 %v3609_v48, %v1420_v33  ;;  %v1950_v23 = vld [vmem:[#allocation2 + $0x20] sm:$0xff]  ;;  %v1229_v36 = vsub.f32 %v2671_v39, %v1197_v51  ;;  %v3762_v57 = vpop.permute.xlu0 %1575 }
 0x202   :  { %v1165_v34 = vmul.f32 %v3586_v13, %v1062_v53  ;;  %1676 = vst.msk [vmem:[#allocation2 + $0x40] sm:$0xff] %vm1667_vm12, %v1643_v54  ;;  %v2589_v24 = vpop.f32.mrb[20].mxu1  ;;  %2000 = vperm.xlu0 %2654, %v1950_v23   ;;  %v1452_v1 = vmul.f32 %v3609_v48, %v1419_v25  ;;  %v1228_v47 = vsub.f32 %v2672_v0, %v1196_v2 }
 0x203   :  { %v1199_v32 = vadd.f32 %v3589_v49, %v1166_v22  ;;  %v1077_v60 = vadd.f32 %v2589_v24, %v3558_v31  ;;  %v1646_v16 = vsub.f32 %v1453_v55, %v3620_v58  ;;  %v1071_v21 = vpop.f32.mrb[21].mxu1  ;;  %v1422_v46 = vsub.f32 %v1229_v36, %v3514_v18  ;;  %v2673_v18 = vld [vmem:[%s4059_s1 + $0x78] sm:$0xff] }
 0x204   :  { %v1198_v63 = vadd.f32 %v3589_v49, %v1165_v34  ;;  %v1072_v4 = vadd.f32 %v1071_v21, %v3558_v31  ;;  %v1645_v26 = vsub.f32 %v1452_v1, %v3627_v19  ;;  %v1953_v62 = vld [vmem:[#allocation2 + $0x38] sm:$0xff]  ;;  %v1421_v14 = vsub.f32 %v1228_v47, %v3516_v5  ;;  %v2676_v47 = vld [vmem:[%s4059_s1 + $0x80] sm:$0xff] }
 0x205   :  { %v1168_v38 = vmul.f32 %v3586_v13, %v1077_v60  ;;  %1679 = vst.msk [vmem:[#allocation2 + $0x58] sm:$0xff] %vm1667_vm12, %v1646_v16  ;;  %2015 = vperm.xlu1 %2655, %v1953_v62   ;;  %v1455_v58 = vmul.f32 %v3609_v48, %v1422_v46  ;;  %v1952_v15 = vld [vmem:[#allocation2 + $0x30] sm:$0xff]  ;;  %v1231_v51 = vsub.f32 %v2673_v18, %v1199_v32  ;;  %v3790_v60 = vpop.permute.xlu1 %1581 }
 0x206   :  { %v1167_v19 = vmul.f32 %v3586_v13, %v1072_v4  ;;  %1678 = vst.msk [vmem:[#allocation2 + $0x50] sm:$0xff] %vm1667_vm12, %v1645_v26  ;;  %v2592_v5 = vpop.f32.mrb[22].mxu1  ;;  %2010 = vperm.xlu0 %2654, %v1952_v15   ;;  %v1454_v45 = vmul.f32 %v3609_v48, %v1421_v14  ;;  %v1230_v33 = vsub.f32 %v2674_v3, %v1198_v63  ;;  %v3796_v26 = vpop.permute.xlu0 %1579 }
 0x207   :  { %v1201_v2 = vadd.f32 %v3589_v49, %v1168_v38  ;;  %v1087_v53 = vadd.f32 %v2592_v5, %v3558_v31  ;;  %v1648_v54 = vsub.f32 %v1455_v58, %v3654_v37  ;;  %v1081_v12 = vpop.f32.mrb[23].mxu1  ;;  %v1424_v25 = vsub.f32 %v1231_v51, %v3518_v6  ;;  %v2675_v6 = vld [vmem:[%s4059_s1 + $0x88] sm:$0xff] }
 0x208   :  { %v1200_v22 = vadd.f32 %v3589_v49, %v1167_v19  ;;  %v1082_v55 = vadd.f32 %v1081_v12, %v3558_v31  ;;  %v1647_v23 = vsub.f32 %v1454_v45, %v3660_v52  ;;  %v1955_v39 = vld [vmem:[#allocation2 + $0x48] sm:$0xff]  ;;  %v1423_v36 = vsub.f32 %v1230_v33, %v3520_v28  ;;  %v2678_v45 = vld [vmem:[%s4059_s1 + $0x90] sm:$0xff] }
 0x209   :  { %v1170_v34 = vmul.f32 %v3586_v13, %v1087_v53  ;;  %1681 = vst.msk [vmem:[#allocation2 + $0x68] sm:$0xff] %vm1667_vm12, %v1648_v54  ;;  %2025 = vperm.xlu1 %2655, %v1955_v39   ;;  %v1457_v24 = vmul.f32 %v3609_v48, %v1424_v25  ;;  %v1954_v37 = vld [vmem:[#allocation2 + $0x40] sm:$0xff]  ;;  %v1233_v1 = vsub.f32 %v2675_v6, %v1201_v2 }
 0x20a   :  { %v1169_v0 = vmul.f32 %v3586_v13, %v1082_v55  ;;  %1680 = vst.msk [vmem:[#allocation2 + $0x60] sm:$0xff] %vm1667_vm12, %v1647_v23  ;;  %v2595_v52 = vpop.f32.mrb[24].mxu1  ;;  %2020 = vperm.xlu0 %2654, %v1954_v37   ;;  %v1456_v28 = vmul.f32 %v3609_v48, %v1423_v36  ;;  %v1232_v32 = vsub.f32 %v2676_v47, %v1200_v22  ;;  %v3822_v36 = vpop.permute.xlu1 %1585 }
 0x20b   :  { %v1203_v16 = vadd.f32 %v3589_v49, %v1170_v34  ;;  %v1097_v21 = vadd.f32 %v2595_v52, %v3558_v31  ;;  %v1650_v46 = vsub.f32 %v1457_v24, %v3686_v50  ;;  %v1091_v63 = vpop.f32.mrb[25].mxu1  ;;  %v1426_v4 = vsub.f32 %v1233_v1, %v3522_v27  ;;  %v2677_v27 = vld [vmem:[%s4059_s1 + $0x98] sm:$0xff]  ;;  %v3830_v6 = vpop.permute.xlu0 %1583 }
 0x20c   :  { %v1202_v62 = vadd.f32 %v3589_v49, %v1169_v0  ;;  %v1092_v14 = vadd.f32 %v1091_v63, %v3558_v31  ;;  %v1649_v38 = vsub.f32 %v1456_v28, %v3694_v56  ;;  %v1957_v58 = vld [vmem:[#allocation2 + $0x58] sm:$0xff]  ;;  %v1425_v15 = vsub.f32 %v1232_v32, %v3524_v42  ;;  %v2680_v0 = vld [vmem:[%s4059_s1 + $0xa0] sm:$0xff] }
 0x20d   :  { %v1172_v18 = vmul.f32 %v3586_v13, %v1097_v21  ;;  %1683 = vst.msk [vmem:[#allocation2 + $0x78] sm:$0xff] %vm1667_vm12, %v1650_v46  ;;  %2035 = vperm.xlu1 %2655, %v1957_v58   ;;  %v1459_v50 = vmul.f32 %v3609_v48, %v1426_v4  ;;  %v1956_v51 = vld [vmem:[#allocation2 + $0x50] sm:$0xff]  ;;  %v1235_v19 = vsub.f32 %v2677_v27, %v1203_v16 }
 0x20e   :  { %v1171_v5 = vmul.f32 %v3586_v13, %v1092_v14  ;;  %1682 = vst.msk [vmem:[#allocation2 + $0x70] sm:$0xff] %vm1667_vm12, %v1649_v38  ;;  %v2598_v56 = vpop.f32.mrb[26].mxu1  ;;  %2030 = vperm.xlu0 %2654, %v1956_v51   ;;  %v1458_v42 = vmul.f32 %v3609_v48, %v1425_v15  ;;  %v1234_v3 = vsub.f32 %v2678_v45, %v1202_v62  ;;  %v3858_v27 = vpop.permute.xlu1 %1589 }
 0x20f   :  { %v1205_v33 = vadd.f32 %v3589_v49, %v1172_v18  ;;  %v1107_v2 = vadd.f32 %v2598_v56, %v3558_v31  ;;  %v1652_v53 = vsub.f32 %v1459_v50, %v3722_v61  ;;  %v1101_v54 = vpop.f32.mrb[27].mxu1  ;;  %v1428_v12 = vsub.f32 %v1235_v19, %v3526_v41  ;;  %v2679_v41 = vld [vmem:[%s4059_s1 + $0xa8] sm:$0xff]  ;;  %v2682_v50 = vld [vmem:[%s4059_s1 + $0xb0] sm:$0xff] }
 0x210   :  { %v1204_v25 = vadd.f32 %v3589_v49, %v1171_v5  ;;  %v1102_v22 = vadd.f32 %v1101_v54, %v3558_v31  ;;  %v1651_v55 = vsub.f32 %v1458_v42, %v3728_v35  ;;  %v1959_v23 = vld [vmem:[#allocation2 + $0x68] sm:$0xff]  ;;  %v1427_v39 = vsub.f32 %v1234_v3, %v3528_v7  ;;  %v3864_v3 = vpop.permute.xlu0 %1587 }
 0x211   :  { %v1174_v34 = vmul.f32 %v3586_v13, %v1107_v2  ;;  %1685 = vst.msk [vmem:[#allocation2 + $0x88] sm:$0xff] %vm1667_vm12, %v1652_v53  ;;  %2045 = vperm.xlu1 %2655, %v1959_v23   ;;  %v1461_v61 = vmul.f32 %v3609_v48, %v1428_v12  ;;  %v1958_v24 = vld [vmem:[#allocation2 + $0x60] sm:$0xff]  ;;  %v1237_v37 = vsub.f32 %v2679_v41, %v1205_v33 }
 0x212   :  { %v1173_v35 = vmul.f32 %v3586_v13, %v1102_v22  ;;  %1684 = vst.msk [vmem:[#allocation2 + $0x80] sm:$0xff] %vm1667_vm12, %v1651_v55  ;;  %v2601_v7 = vpop.f32.mrb[28].mxu1  ;;  %2040 = vperm.xlu0 %2654, %v1958_v24   ;;  %v1460_v1 = vmul.f32 %v3609_v48, %v1427_v39  ;;  %v1236_v52 = vsub.f32 %v2680_v0, %v1204_v25  ;;  %v2684_v39 = vld [vmem:[%s4059_s1 + $0xc0] sm:$0xff] }
 0x213   :  { %v1207_v28 = vadd.f32 %v3589_v49, %v1174_v34  ;;  %v1117_v47 = vadd.f32 %v2601_v7, %v3558_v31  ;;  %v1654_v32 = vsub.f32 %v1461_v61, %v3754_v40  ;;  %v1111_v16 = vpop.f32.mrb[29].mxu1  ;;  %v1430_v21 = vsub.f32 %v1237_v37, %v3530_v17  ;;  %v2681_v17 = vld [vmem:[%s4059_s1 + $0xb8] sm:$0xff] }
 0x214   :  { %v1206_v46 = vadd.f32 %v3589_v49, %v1173_v35  ;;  %v1112_v63 = vadd.f32 %v1111_v16, %v3558_v31  ;;  %v1653_v4 = vsub.f32 %v1460_v1, %v3762_v57  ;;  %v1961_v62 = vld [vmem:[#allocation2 + $0x78] sm:$0xff]  ;;  %v1429_v14 = vsub.f32 %v1236_v52, %v3532_v59 }
 0x215   :  { %v1176_v38 = vmul.f32 %v3586_v13, %v1117_v47  ;;  %1687 = vst.msk [vmem:[#allocation2 + $0x98] sm:$0xff] %vm1667_vm12, %v1654_v32  ;;  %2055 = vperm.xlu1 %2655, %v1961_v62   ;;  %v1463_v58 = vmul.f32 %v3609_v48, %v1430_v21  ;;  %v1960_v40 = vld [vmem:[#allocation2 + $0x70] sm:$0xff]  ;;  %v1239_v15 = vsub.f32 %v2681_v17, %v1207_v28  ;;  %v1594_v47 = vpop.permute.xlu1 %1593 }
 0x216   :  { %v1175_v18 = vmul.f32 %v3586_v13, %v1112_v63  ;;  %1686 = vst.msk [vmem:[#allocation2 + $0x90] sm:$0xff] %vm1667_vm12, %v1653_v4  ;;  %v2604_v57 = vpop.f32.mrb[30].mxu1  ;;  %2050 = vperm.xlu0 %2654, %v1960_v40   ;;  %v1462_v59 = vmul.f32 %v3609_v48, %v1429_v14  ;;  %v1238_v51 = vsub.f32 %v2682_v50, %v1206_v46  ;;  %v1592_v46 = vpop.permute.xlu0 %1591  ;;  %v2686_v4 = vld [vmem:[%s4059_s1 + $0xd0] sm:$0xff] }
 0x217   :  { %v1209_v19 = vadd.f32 %v3589_v49, %v1176_v38  ;;  %v1127_v5 = vadd.f32 %v2604_v57, %v3558_v31  ;;  %v1656_v56 = vsub.f32 %v1463_v58, %v3790_v60  ;;  %v1121_v42 = vpop.f32.mrb[31].mxu1  ;;  %v1432_v45 = vsub.f32 %v1239_v15, %v3534_v8  ;;  %v2683_v8 = vld [vmem:[%s4059_s1 + $0xc8] sm:$0xff] }
 0x218   :  { %v1208_v33 = vadd.f32 %v3589_v49, %v1175_v18  ;;  %v1122_v2 = vadd.f32 %v1121_v42, %v3558_v31  ;;  %v1655_v53 = vsub.f32 %v1462_v59, %v3796_v26  ;;  %v1963_v54 = vld [vmem:[#allocation2 + $0x88] sm:$0xff]  ;;  %v1431_v12 = vsub.f32 %v1238_v51, %v3536_v9  ;;  %v2688_v42 = vld [vmem:[%s4059_s1 + $0xe0] sm:$0xff] }
 0x219   :  { %v1178_v25 = vmul.f32 %v3586_v13, %v1127_v5  ;;  %1689 = vst.msk [vmem:[#allocation2 + $0xa8] sm:$0xff] %vm1667_vm12, %v1656_v56  ;;  %2065 = vperm.xlu1 %2655, %v1963_v54   ;;  %v1465_v60 = vmul.f32 %v3609_v48, %v1432_v45  ;;  %v1962_v22 = vld [vmem:[#allocation2 + $0x80] sm:$0xff]  ;;  %v1241_v55 = vsub.f32 %v2683_v8, %v1209_v19  ;;  %v1598_v56 = vpop.permute.xlu1 %1597 }
 0x21a   :  { %v1177_v23 = vmul.f32 %v3586_v13, %v1122_v2  ;;  %1688 = vst.msk [vmem:[#allocation2 + $0xa0] sm:$0xff] %vm1667_vm12, %v1655_v53  ;;  %v2607_v26 = vpop.f32.mrb[32].mxu1  ;;  %2060 = vperm.xlu0 %2654, %v1962_v22   ;;  %v1464_v9 = vmul.f32 %v3609_v48, %v1431_v12  ;;  %v1240_v34 = vsub.f32 %v2684_v39, %v1208_v33  ;;  %v1596_v54 = vpop.permute.xlu0 %1595 }
 0x21b   :  { %v1211_v61 = vadd.f32 %v3589_v49, %v1178_v25  ;;  %v1137_v24 = vadd.f32 %v2607_v26, %v3558_v31  ;;  %v1658_v41 = vsub.f32 %v1465_v60, %v3822_v36  ;;  %v1131_v37 = vpop.f32.mrb[33].mxu1  ;;  %v1434_v35 = vsub.f32 %v1241_v55, %v3538_v10  ;;  %v2685_v10 = vld [vmem:[%s4059_s1 + $0xd8] sm:$0xff] }
 0x21c   :  { %v1210_v7 = vadd.f32 %v3589_v49, %v1177_v23  ;;  %v1132_v1 = vadd.f32 %v1131_v37, %v3558_v31  ;;  %v1657_v0 = vsub.f32 %v1464_v9, %v3830_v6  ;;  %v1965_v52 = vld [vmem:[#allocation2 + $0x98] sm:$0xff]  ;;  %v1433_v28 = vsub.f32 %v1240_v34, %v3540_v44 }
 0x21d   :  { %v1180_v32 = vmul.f32 %v3586_v13, %v1137_v24  ;;  %1691 = vst.msk [vmem:[#allocation2 + $0xb8] sm:$0xff] %vm1667_vm12, %v1658_v41  ;;  %2075 = vperm.xlu1 %2655, %v1965_v52   ;;  %v1467_v36 = vmul.f32 %v3609_v48, %v1434_v35  ;;  %v1964_v16 = vld [vmem:[#allocation2 + $0x90] sm:$0xff]  ;;  %v1243_v21 = vsub.f32 %v2685_v10, %v1211_v61  ;;  %v2689_v9 = vld [vmem:[%s4059_s1 + $0xf8] sm:$0xff]  ;;  %v1602_v37 = vpop.permute.xlu1 %1601  ;;  %v4085_v35 = vld [vmem:[#allocation13_spill] sm:$0xff] }
 0x21e   :  { %v1179_v6 = vmul.f32 %v3586_v13, %v1132_v1  ;;  %1690 = vst.msk [vmem:[#allocation2 + $0xb0] sm:$0xff] %vm1667_vm12, %v1657_v0  ;;  %v2610_v44 = vpop.f32.mrb[34].mxu1  ;;  %2070 = vperm.xlu0 %2654, %v1964_v16   ;;  %v1466_v63 = vmul.f32 %v3609_v48, %v1433_v28  ;;  %v1242_v62 = vsub.f32 %v2686_v4, %v1210_v7  ;;  %v1600_v52 = vpop.permute.xlu0 %1599 }
 0x21f   :  { %v1213_v14 = vadd.f32 %v3589_v49, %v1180_v32  ;;  %v1147_v38 = vadd.f32 %v2610_v44, %v3558_v31  ;;  %v1660_v58 = vsub.f32 %v1467_v36, %v3858_v27  ;;  %v1141_v40 = vpop.f32.mrb[35].mxu1  ;;  %v1436_v17 = vsub.f32 %v1243_v21, %v3542_v30  ;;  %v2687_v30 = vld [vmem:[%s4059_s1 + $0xe8] sm:$0xff] }
 0x220   :  { %v1212_v15 = vadd.f32 %v3589_v49, %v1179_v6  ;;  %v1142_v18 = vadd.f32 %v1141_v40, %v3558_v31  ;;  %v1659_v57 = vsub.f32 %v1466_v63, %v3864_v3  ;;  %v1967_v59 = vld [vmem:[#allocation2 + $0xa8] sm:$0xff]  ;;  %v1435_v50 = vsub.f32 %v1242_v62, %v3544_v43 }
 0x221   :  { %v1182_v51 = vmul.f32 %v3586_v13, %v1147_v38  ;;  %1693 = vst.msk [vmem:[#allocation2 + $0xc8] sm:$0xff] %vm1667_vm12, %v1660_v58  ;;  %2085 = vperm.xlu1 %2655, %v1967_v59   ;;  %v1469_v19 = vmul.f32 %v3609_v48, %v1436_v17  ;;  %v1966_v27 = vld [vmem:[#allocation2 + $0xa0] sm:$0xff]  ;;  %v1245_v5 = vsub.f32 %v2687_v30, %v1213_v14 }
 0x222   :  { %v1181_v31 = vmul.f32 %v3586_v13, %v1142_v18  ;;  %1692 = vst.msk [vmem:[#allocation2 + $0xc0] sm:$0xff] %vm1667_vm12, %v1659_v57  ;;  %2080 = vperm.xlu0 %2654, %v1966_v27   ;;  %v1468_v43 = vmul.f32 %v3609_v48, %v1435_v50  ;;  %v1244_v45 = vsub.f32 %v2688_v42, %v1212_v15  ;;  %v1933_v3 = vpop.f32.mrb[36].mxu1 }
 0x223   :  { %v1215_v33 = vadd.f32 %v3589_v49, %v1182_v51  ;;  %v1662_v2 = vsub.f32 %v1469_v19, %v1594_v47  ;;  %v1438_v53 = vsub.f32 %v1245_v5, %v3546_v29  ;;  %v3925_v12 = vmul.f32 %v1933_v3, %v3586_v13  ;;  %v1935_v25 = vpop.f32.mrb[37].mxu1 }
 0x224   :  { %v1214_v60 = vadd.f32 %v3589_v49, %v1181_v31  ;;  %v1661_v22 = vsub.f32 %v1468_v43, %v1592_v46  ;;  %v1969_v8 = vld [vmem:[#allocation2 + $0xb8] sm:$0xff]  ;;  %v1437_v55 = vsub.f32 %v1244_v45, %v3548_v20  ;;  %v3930_v23 = vmul.f32 %v1935_v25, %v3586_v13  ;;  %v2690_v20 = vld [vmem:[%s4059_s1 + $0xf0] sm:$0xff]  ;;  %s2781_s1 = smov [#allocation7]  }
 0x225   :  { %1695 = vst.msk [vmem:[#allocation2 + $0xd8] sm:$0xff] %vm1667_vm12, %v1662_v2  ;;  %2095 = vperm.xlu1 %2655, %v1969_v8   ;;  %v1471_v26 = vmul.f32 %v3609_v48, %v1438_v53  ;;  %v1968_v29 = vld [vmem:[#allocation2 + $0xb0] sm:$0xff]  ;;  %v1247_v39 = vsub.f32 %v2689_v9, %v1215_v33  ;;  %s2290_s5 = sshll.u32 %s2781_s1, 4  ;;  %s2291_s5 = int_to_ptr.vmem [resolvable:$true] %s2290_s5 }
 0x226   :  { %1694 = vst.msk [vmem:[#allocation2 + $0xd0] sm:$0xff] %vm1667_vm12, %v1661_v22  ;;  %2090 = vperm.xlu0 %2654, %v1968_v29   ;;  %v1470_v49 = vmul.f32 %v3609_v48, %v1437_v55  ;;  %v1246_v13 = vsub.f32 %v2690_v20, %v1214_v60  ;;  %s2703_s22 = scalar_lea.vmem %s2291_s5, 32  ;;  %p2708_p6 = scmp.lt.s32.totalorder %s2291_s5, %s2291_s5 }
 0x227   :  { %v1664_v34 = vsub.f32 %v1471_v26, %v1598_v56  ;;  %v1440_v61 = vsub.f32 %v1247_v39, %v3550_v11  ;;  %p2704_p5 = scmp.ne.s32.totalorder %s2291_s5, %s2703_s22  ;;  %p2709_p7 = scmp.lt.s32.totalorder %s2703_s22, %s2703_s22 }
 0x228   :  { %v1663_v24 = vsub.f32 %v1470_v49, %v1596_v54  ;;  %v1971_v41 = vld [vmem:[#allocation2 + $0xc8] sm:$0xff]  ;;  %v1439_v7 = vsub.f32 %v1246_v13, %v4085_v35 }
 0x229   :  { %1697 = vst.msk [vmem:[#allocation2 + $0xe8] sm:$0xff] %vm1667_vm12, %v1664_v34  ;;  %2105 = vperm.xlu1 %2655, %v1971_v41   ;;  %v1473_v1 = vmul.f32 %v3609_v48, %v1440_v61  ;;  %v1970_v0 = vld [vmem:[#allocation2 + $0xc0] sm:$0xff]  ;;  %p2710_p8 = por %p2709_p7, %p2708_p6 }
 0x22a   :  { %1696 = vst.msk [vmem:[#allocation2 + $0xe0] sm:$0xff] %vm1667_vm12, %v1663_v24  ;;  %2100 = vperm.xlu0 %2654, %v1970_v0   ;;  %v1472_v28 = vmul.f32 %v3609_v48, %v1439_v7 }
 0x22b   :  { %v1666_v47 = vsub.f32 %v1473_v1, %v1602_v37  ;;  %p2711_p9 = pnand %p2710_p8, %p2704_p5 }
 0x22c   :  { %v1665_v32 = vsub.f32 %v1472_v28, %v1600_v52  ;;  %v1973_v11 = vld [vmem:[#allocation2 + $0xd8] sm:$0xff] }
 0x22d   :  { %1699 = vst.msk [vmem:[#allocation2 + $0xf8] sm:$0xff] %vm1667_vm12, %v1666_v47  ;;  %2115 = vperm.xlu1 %2655, %v1973_v11   ;;  %v1972_v36 = vld [vmem:[#allocation2 + $0xd0] sm:$0xff] }
 0x22e   :  { %1698 = vst.msk [vmem:[#allocation2 + $0xf0] sm:$0xff] %vm1667_vm12, %v1665_v32  ;;  %2110 = vperm.xlu0 %2654, %v1972_v36  }
 0x230   :  { %v1975_v16 = vld [vmem:[#allocation2 + $0xe8] sm:$0xff] }
 0x231   :  { %2125 = vperm.xlu1 %2655, %v1975_v16   ;;  %v1974_v10 = vld [vmem:[#allocation2 + $0xe0] sm:$0xff] }
 0x232   :  { %2120 = vperm.xlu0 %2654, %v1974_v10  }
 0x234   :  { %v1977_v21 = vld [vmem:[#allocation2 + $0xf8] sm:$0xff] }
 0x235   :  { %2135 = vperm.xlu1 %2655, %v1977_v21   ;;  %v1976_v46 = vld [vmem:[#allocation2 + $0xf0] sm:$0xff] }
 0x236   :  { %2130 = vperm.xlu0 %2654, %v1976_v46  }
 0x237   :  { %2714 = shalt.err (!%p2711_p9)
}
 0x238   :  { %s2715_s24 = scalar_lea.hbm %s4070_s12, 32 }
 0x239   :  { %p2716_p10 = scmp.ne.s32.totalorder %s4070_s12, %s2715_s24  ;;  %p2719_p11 = scmp.lt.u32.totalorder %s2715_s24, %s4070_s12 }
 0x23b   :  { %p2721_p12 = pnand %p2719_p11, %p2716_p10 }
 0x23d   :  { %2724 = shalt.err (!%p2721_p12)
}
 0x23e   :  { %2293 = dma.vmem_to_hbm [thread:$0]  %s2291_s5, 32, %s4070_s12, [#allocation8]  }
 0x23f   :  { %s2725_s30 = scalar_lea.vmem %s2281_s21, 32  ;;  %p2730_p0 = scmp.lt.s32.totalorder %s2281_s21, %s2281_s21 }
 0x240   :  { %p2726_p13 = scmp.ne.s32.totalorder %s2281_s21, %s2725_s30  ;;  %p2731_p1 = scmp.lt.s32.totalorder %s2725_s30, %s2725_s30 }
 0x242   :  { %p2732_p2 = por %p2731_p1, %p2730_p0 }
 0x244   :  { %p2733_p3 = pnand %p2732_p2, %p2726_p13 }
 0x246   :  { %2736 = shalt.err (!%p2733_p3)
}
 0x247   :  { %s2737_s0 = scalar_lea.hbm %s4069_s11, 32 }
 0x248   :  { %p2738_p4 = scmp.ne.s32.totalorder %s4069_s11, %s2737_s0  ;;  %p2741_p5 = scmp.lt.u32.totalorder %s2737_s0, %s4069_s11 }
 0x24a   :  { %p2743_p6 = pnand %p2741_p5, %p2738_p4 }
 0x24c   :  { %2746 = shalt.err (!%p2743_p6)
}
 0x24d   :  { %2283 = dma.vmem_to_hbm [thread:$0]  %s2281_s21, 32, %s4069_s11, [#allocation6]   ;;  %v4086_v44 = vld [vmem:[#allocation14_spill] sm:$0xff] }
 0x24e   :  { %s1938_s18 = smul.f32 0.0, %s3155_s14  ;;  %v2140_v63 = vsub.s32 0, %v4086_v44  ;;  %s2783_s11 = smov [#allocation9]  }
 0x24f   :  { %s2299_s14 = sshll.u32 %s2783_s11, 4  ;;  %s2300_s14 = int_to_ptr.vmem [resolvable:$true] %s2299_s14 }
 0x250   :  { %s1939_s7 = ssub.f32 0.0, %s1938_s18  ;;  %s2747_s19 = scalar_lea.vmem %s2300_s14, 8192 }
 0x251   :  { %p2748_p7 = scmp.ne.s32.totalorder %s2300_s14, %s2747_s19  ;;  %p2752_p8 = scmp.lt.s32.totalorder %s2300_s14, %s2300_s14 }
 0x252   :  { %v1943_v48 = vstv %s1939_s7  ;;  %p2753_p9 = scmp.lt.s32.totalorder %s2747_s19, %s2747_s19 }
 0x253   :  { %v1944_v6 = vsub.f32 %v1943_v48, %v3925_v12  ;;  %v1945_v4 = vsub.f32 %v1943_v48, %v3930_v23 }
 0x254   :  { %p2754_p10 = por %p2753_p9, %p2752_p8 }
 0x255   :  { %v3978_v62 = vrot.slane %v1944_v6, %v2140_v63  ;;  %v3980_v14 = vrot.slane %v1945_v4, %v2140_v63 }
 0x256   :  { %p2755_p11 = pnand %p2754_p10, %p2748_p7 }
 0x278   :  { %v1986_v38 = vpop.permute.xlu1 %1985 }
 0x279   :  { %v2148_v58 = vadd.f32 %v3978_v62, %v1986_v38  ;;  %v2149_v40 = vadd.f32 %v3980_v14, %v1986_v38  ;;  %v1981_v17 = vpop.permute.xlu0 %1980 }
 0x27a   :  { %v2146_v15 = vadd.f32 %v3978_v62, %v1981_v17  ;;  %v2147_v18 = vadd.f32 %v3980_v14, %v1981_v17 }
 0x27b   :  { %2212 = vst [vmem:[#allocation9 + $0x10] sm:$0xff] %v2148_v58  ;;  %2213 = vst [vmem:[#allocation9 + $0x18] sm:$0xff] %v2149_v40 }
 0x27c   :  { %2210 = vst [vmem:[#allocation9] sm:$0xff] %v2146_v15  ;;  %2211 = vst [vmem:[#allocation9 + $0x8] sm:$0xff] %v2147_v18  ;;  %v1996_v57 = vpop.permute.xlu1 %1995 }
 0x27d   :  { %v2152_v59 = vadd.f32 %v3978_v62, %v1996_v57  ;;  %v2153_v50 = vadd.f32 %v3980_v14, %v1996_v57  ;;  %v1991_v51 = vpop.permute.xlu0 %1990 }
 0x27e   :  { %v2150_v19 = vadd.f32 %v3978_v62, %v1991_v51  ;;  %v2151_v27 = vadd.f32 %v3980_v14, %v1991_v51 }
 0x27f   :  { %2216 = vst [vmem:[#allocation9 + $0x30] sm:$0xff] %v2152_v59  ;;  %2217 = vst [vmem:[#allocation9 + $0x38] sm:$0xff] %v2153_v50 }
 0x280   :  { %2214 = vst [vmem:[#allocation9 + $0x20] sm:$0xff] %v2150_v19  ;;  %2215 = vst [vmem:[#allocation9 + $0x28] sm:$0xff] %v2151_v27  ;;  %v2006_v30 = vpop.permute.xlu1 %2005 }
 0x281   :  { %v2156_v5 = vadd.f32 %v3978_v62, %v2006_v30  ;;  %v2157_v31 = vadd.f32 %v3980_v14, %v2006_v30  ;;  %v2001_v43 = vpop.permute.xlu0 %2000 }
 0x282   :  { %v2154_v56 = vadd.f32 %v3978_v62, %v2001_v43  ;;  %v2155_v42 = vadd.f32 %v3980_v14, %v2001_v43 }
 0x283   :  { %2220 = vst [vmem:[#allocation9 + $0x50] sm:$0xff] %v2156_v5  ;;  %2221 = vst [vmem:[#allocation9 + $0x58] sm:$0xff] %v2157_v31 }
 0x284   :  { %2218 = vst [vmem:[#allocation9 + $0x40] sm:$0xff] %v2154_v56  ;;  %2219 = vst [vmem:[#allocation9 + $0x48] sm:$0xff] %v2155_v42  ;;  %v2016_v45 = vpop.permute.xlu1 %2015 }
 0x285   :  { %v2160_v3 = vadd.f32 %v3978_v62, %v2016_v45  ;;  %v2161_v33 = vadd.f32 %v3980_v14, %v2016_v45  ;;  %v2011_v2 = vpop.permute.xlu0 %2010 }
 0x286   :  { %v2158_v53 = vadd.f32 %v3978_v62, %v2011_v2  ;;  %v2159_v54 = vadd.f32 %v3980_v14, %v2011_v2 }
 0x287   :  { %2224 = vst [vmem:[#allocation9 + $0x70] sm:$0xff] %v2160_v3  ;;  %2225 = vst [vmem:[#allocation9 + $0x78] sm:$0xff] %v2161_v33 }
 0x288   :  { %2222 = vst [vmem:[#allocation9 + $0x60] sm:$0xff] %v2158_v53  ;;  %2223 = vst [vmem:[#allocation9 + $0x68] sm:$0xff] %v2159_v54  ;;  %v2026_v12 = vpop.permute.xlu1 %2025 }
 0x289   :  { %v2164_v25 = vadd.f32 %v3978_v62, %v2026_v12  ;;  %v2165_v60 = vadd.f32 %v3980_v14, %v2026_v12  ;;  %v2021_v22 = vpop.permute.xlu0 %2020 }
 0x28a   :  { %v2162_v8 = vadd.f32 %v3978_v62, %v2021_v22  ;;  %v2163_v55 = vadd.f32 %v3980_v14, %v2021_v22 }
 0x28b   :  { %2228 = vst [vmem:[#allocation9 + $0x90] sm:$0xff] %v2164_v25  ;;  %2229 = vst [vmem:[#allocation9 + $0x98] sm:$0xff] %v2165_v60 }
 0x28c   :  { %2226 = vst [vmem:[#allocation9 + $0x80] sm:$0xff] %v2162_v8  ;;  %2227 = vst [vmem:[#allocation9 + $0x88] sm:$0xff] %v2163_v55  ;;  %v2036_v23 = vpop.permute.xlu1 %2035 }
 0x28d   :  { %v2168_v26 = vadd.f32 %v3978_v62, %v2036_v23  ;;  %v2169_v29 = vadd.f32 %v3980_v14, %v2036_v23  ;;  %v2031_v9 = vpop.permute.xlu0 %2030 }
 0x28e   :  { %v2166_v39 = vadd.f32 %v3978_v62, %v2031_v9  ;;  %v2167_v49 = vadd.f32 %v3980_v14, %v2031_v9 }
 0x28f   :  { %2232 = vst [vmem:[#allocation9 + $0xb0] sm:$0xff] %v2168_v26  ;;  %2233 = vst [vmem:[#allocation9 + $0xb8] sm:$0xff] %v2169_v29 }
 0x290   :  { %2230 = vst [vmem:[#allocation9 + $0xa0] sm:$0xff] %v2166_v39  ;;  %2231 = vst [vmem:[#allocation9 + $0xa8] sm:$0xff] %v2167_v49  ;;  %v2046_v20 = vpop.permute.xlu1 %2045 }
 0x291   :  { %v2172_v13 = vadd.f32 %v3978_v62, %v2046_v20  ;;  %v2173_v34 = vadd.f32 %v3980_v14, %v2046_v20  ;;  %v2041_v61 = vpop.permute.xlu0 %2040 }
 0x292   :  { %v2170_v24 = vadd.f32 %v3978_v62, %v2041_v61  ;;  %v2171_v41 = vadd.f32 %v3980_v14, %v2041_v61 }
 0x293   :  { %2236 = vst [vmem:[#allocation9 + $0xd0] sm:$0xff] %v2172_v13  ;;  %2237 = vst [vmem:[#allocation9 + $0xd8] sm:$0xff] %v2173_v34 }
 0x294   :  { %2234 = vst [vmem:[#allocation9 + $0xc0] sm:$0xff] %v2170_v24  ;;  %2235 = vst [vmem:[#allocation9 + $0xc8] sm:$0xff] %v2171_v41  ;;  %v2056_v37 = vpop.permute.xlu1 %2055 }
 0x295   :  { %v2176_v35 = vadd.f32 %v3978_v62, %v2056_v37  ;;  %v2177_v7 = vadd.f32 %v3980_v14, %v2056_v37  ;;  %v2051_v1 = vpop.permute.xlu0 %2050 }
 0x296   :  { %v2174_v0 = vadd.f32 %v3978_v62, %v2051_v1  ;;  %v2175_v52 = vadd.f32 %v3980_v14, %v2051_v1 }
 0x297   :  { %2240 = vst [vmem:[#allocation9 + $0xf0] sm:$0xff] %v2176_v35  ;;  %2241 = vst [vmem:[#allocation9 + $0xf8] sm:$0xff] %v2177_v7 }
 0x298   :  { %2238 = vst [vmem:[#allocation9 + $0xe0] sm:$0xff] %v2174_v0  ;;  %2239 = vst [vmem:[#allocation9 + $0xe8] sm:$0xff] %v2175_v52  ;;  %v2066_v28 = vpop.permute.xlu1 %2065 }
 0x299   :  { %v2180_v47 = vadd.f32 %v3978_v62, %v2066_v28  ;;  %v2181_v32 = vadd.f32 %v3980_v14, %v2066_v28  ;;  %v2061_v11 = vpop.permute.xlu0 %2060 }
 0x29a   :  { %v2178_v36 = vadd.f32 %v3978_v62, %v2061_v11  ;;  %v2179_v16 = vadd.f32 %v3980_v14, %v2061_v11 }
 0x29b   :  { %2244 = vst [vmem:[#allocation9 + $0x110] sm:$0xff] %v2180_v47  ;;  %2245 = vst [vmem:[#allocation9 + $0x118] sm:$0xff] %v2181_v32 }
 0x29c   :  { %2242 = vst [vmem:[#allocation9 + $0x100] sm:$0xff] %v2178_v36  ;;  %2243 = vst [vmem:[#allocation9 + $0x108] sm:$0xff] %v2179_v16  ;;  %v2076_v10 = vpop.permute.xlu1 %2075 }
 0x29d   :  { %v2184_v21 = vadd.f32 %v3978_v62, %v2076_v10  ;;  %v2185_v46 = vadd.f32 %v3980_v14, %v2076_v10  ;;  %v2071_v48 = vpop.permute.xlu0 %2070 }
 0x29e   :  { %v2182_v6 = vadd.f32 %v3978_v62, %v2071_v48  ;;  %v2183_v44 = vadd.f32 %v3980_v14, %v2071_v48 }
 0x29f   :  { %2248 = vst [vmem:[#allocation9 + $0x130] sm:$0xff] %v2184_v21  ;;  %2249 = vst [vmem:[#allocation9 + $0x138] sm:$0xff] %v2185_v46 }
 0x2a0   :  { %2246 = vst [vmem:[#allocation9 + $0x120] sm:$0xff] %v2182_v6  ;;  %2247 = vst [vmem:[#allocation9 + $0x128] sm:$0xff] %v2183_v44  ;;  %v2086_v63 = vpop.permute.xlu1 %2085 }
 0x2a1   :  { %v2188_v4 = vadd.f32 %v3978_v62, %v2086_v63  ;;  %v2189_v38 = vadd.f32 %v3980_v14, %v2086_v63  ;;  %v2081_v58 = vpop.permute.xlu0 %2080 }
 0x2a2   :  { %v2186_v40 = vadd.f32 %v3978_v62, %v2081_v58  ;;  %v2187_v17 = vadd.f32 %v3980_v14, %v2081_v58 }
 0x2a3   :  { %2252 = vst [vmem:[#allocation9 + $0x150] sm:$0xff] %v2188_v4  ;;  %2253 = vst [vmem:[#allocation9 + $0x158] sm:$0xff] %v2189_v38 }
 0x2a4   :  { %2250 = vst [vmem:[#allocation9 + $0x140] sm:$0xff] %v2186_v40  ;;  %2251 = vst [vmem:[#allocation9 + $0x148] sm:$0xff] %v2187_v17  ;;  %v2096_v15 = vpop.permute.xlu1 %2095 }
 0x2a5   :  { %v2192_v18 = vadd.f32 %v3978_v62, %v2096_v15  ;;  %v2193_v57 = vadd.f32 %v3980_v14, %v2096_v15  ;;  %v2091_v59 = vpop.permute.xlu0 %2090 }
 0x2a6   :  { %v2190_v50 = vadd.f32 %v3978_v62, %v2091_v59  ;;  %v2191_v51 = vadd.f32 %v3980_v14, %v2091_v59 }
 0x2a7   :  { %2256 = vst [vmem:[#allocation9 + $0x170] sm:$0xff] %v2192_v18  ;;  %2257 = vst [vmem:[#allocation9 + $0x178] sm:$0xff] %v2193_v57 }
 0x2a8   :  { %2254 = vst [vmem:[#allocation9 + $0x160] sm:$0xff] %v2190_v50  ;;  %2255 = vst [vmem:[#allocation9 + $0x168] sm:$0xff] %v2191_v51  ;;  %v2106_v19 = vpop.permute.xlu1 %2105 }
 0x2a9   :  { %v2196_v27 = vadd.f32 %v3978_v62, %v2106_v19  ;;  %v2197_v30 = vadd.f32 %v3980_v14, %v2106_v19  ;;  %v2101_v5 = vpop.permute.xlu0 %2100 }
 0x2aa   :  { %v2194_v31 = vadd.f32 %v3978_v62, %v2101_v5  ;;  %v2195_v43 = vadd.f32 %v3980_v14, %v2101_v5 }
 0x2ab   :  { %2260 = vst [vmem:[#allocation9 + $0x190] sm:$0xff] %v2196_v27  ;;  %2261 = vst [vmem:[#allocation9 + $0x198] sm:$0xff] %v2197_v30 }
 0x2ac   :  { %2258 = vst [vmem:[#allocation9 + $0x180] sm:$0xff] %v2194_v31  ;;  %2259 = vst [vmem:[#allocation9 + $0x188] sm:$0xff] %v2195_v43  ;;  %v2116_v56 = vpop.permute.xlu1 %2115 }
 0x2ad   :  { %v2200_v42 = vadd.f32 %v3978_v62, %v2116_v56  ;;  %v2201_v45 = vadd.f32 %v3980_v14, %v2116_v56  ;;  %v2111_v3 = vpop.permute.xlu0 %2110 }
 0x2ae   :  { %v2198_v33 = vadd.f32 %v3978_v62, %v2111_v3  ;;  %v2199_v2 = vadd.f32 %v3980_v14, %v2111_v3 }
 0x2af   :  { %2264 = vst [vmem:[#allocation9 + $0x1b0] sm:$0xff] %v2200_v42  ;;  %2265 = vst [vmem:[#allocation9 + $0x1b8] sm:$0xff] %v2201_v45 }
 0x2b0   :  { %2262 = vst [vmem:[#allocation9 + $0x1a0] sm:$0xff] %v2198_v33  ;;  %2263 = vst [vmem:[#allocation9 + $0x1a8] sm:$0xff] %v2199_v2  ;;  %v2126_v53 = vpop.permute.xlu1 %2125 }
 0x2b1   :  { %v2204_v54 = vadd.f32 %v3978_v62, %v2126_v53  ;;  %v2205_v12 = vadd.f32 %v3980_v14, %v2126_v53  ;;  %v2121_v25 = vpop.permute.xlu0 %2120 }
 0x2b2   :  { %v2202_v60 = vadd.f32 %v3978_v62, %v2121_v25  ;;  %v2203_v22 = vadd.f32 %v3980_v14, %v2121_v25 }
 0x2b3   :  { %2268 = vst [vmem:[#allocation9 + $0x1d0] sm:$0xff] %v2204_v54  ;;  %2269 = vst [vmem:[#allocation9 + $0x1d8] sm:$0xff] %v2205_v12 }
 0x2b4   :  { %2266 = vst [vmem:[#allocation9 + $0x1c0] sm:$0xff] %v2202_v60  ;;  %2267 = vst [vmem:[#allocation9 + $0x1c8] sm:$0xff] %v2203_v22  ;;  %v2136_v8 = vpop.permute.xlu1 %2135 }
 0x2b5   :  { %v2208_v55 = vadd.f32 %v3978_v62, %v2136_v8  ;;  %v2209_v23 = vadd.f32 %v3980_v14, %v2136_v8  ;;  %v2131_v26 = vpop.permute.xlu0 %2130 }
 0x2b6   :  { %v2206_v29 = vadd.f32 %v3978_v62, %v2131_v26  ;;  %v2207_v9 = vadd.f32 %v3980_v14, %v2131_v26 }
 0x2b7   :  { %2272 = vst [vmem:[#allocation9 + $0x1f0] sm:$0xff] %v2208_v55  ;;  %2273 = vst [vmem:[#allocation9 + $0x1f8] sm:$0xff] %v2209_v23 }
 0x2b8   :  { %2270 = vst [vmem:[#allocation9 + $0x1e0] sm:$0xff] %v2206_v29  ;;  %2271 = vst [vmem:[#allocation9 + $0x1e8] sm:$0xff] %v2207_v9 }
 0x2b9   :  { %2758 = shalt.err (!%p2755_p11)
}
 0x2ba   :  { %s2759_s5 = scalar_lea.hbm %s4071_s13, 8192 }
 0x2bb   :  { %p2760_p12 = scmp.ne.s32.totalorder %s4071_s13, %s2759_s5  ;;  %p2763_p13 = scmp.lt.u32.totalorder %s2759_s5, %s4071_s13 }
 0x2bd   :  { %p2765_p0 = pnand %p2763_p13, %p2760_p12 }
 0x2bf   :  { %2768 = shalt.err (!%p2765_p0)
}
 0x2c0   :  { %s2784_s9 = smov 256   ;;  %s2785_s24 = smov 16  }
 0x2c1   :  { %2305 = dma.vmem_to_hbm [thread:$0]  %s2300_s14, 8192, %s4071_s13, [#allocation8], %s2784_s9, %s2784_s9, %s2785_s24  }
 0x2c2   :  { %2771 = dma.done.wait [#allocation6], 32  }
 0x2c3   :  { %2772 = vsyncadd [#allocation6], 4294967264 }
 0x2c4   :  { %2773 = dma.done.wait [#allocation8], 8224  }
 0x2c5   :  { %2774 = vsyncadd [#allocation8], 4294959072 }
 0x2c6   :  { %2315 = vsyncpa [#allocation6], 1 }
 0x2c7   :  { %2316 = vsyncpa [#allocation8], 1 }

</bundles_post_ra>
